<compile_context>
chip_gen: v5e
topology: v5e:2x2
jax: 0.10.0
libtpu: 0.0.40
codegen_flags: <defaults>
</compile_context>

<pallas_src>
import functools

import jax
import jax.numpy as jnp
from jax.experimental import pallas as pl
from jax.experimental.pallas import tpu as pltpu


# -----------------------------------------------------------------------------
# Pallas kernels
# -----------------------------------------------------------------------------

def _conv_block_kernel(x_ref, w_ref, b_ref, y_ref, stat_ref, *, k):
    """Fused conv(kxk, stride 1) + bias + ReLU + 2x2/2 max-pool + BN partial
    statistics for ONE image (the grid iterates over the batch).

    x_ref:    (1, H, W, Cin)     bf16  un-normalized output of the previous block
    w_ref:    (k*k, Cin, Cout)   bf16  previous block's BN already folded in
    b_ref:    (1, Cout)          f32
    y_ref:    (1, PH, PW, Cout)  bf16  pooled, un-normalized output
    stat_ref: (1, 2, Cout)       f32   [sum, sum_of_squares] over PH*PW
    """
    _, ph, pw, cout = y_ref.shape
    owt = 2 * pw                      # conv columns actually consumed by the pool
    bias = b_ref[...]                 # (1, Cout)

    # 0/1 selection matrices that pick even / odd conv columns: the stride-2
    # width downsample of the pool becomes a cheap MXU matmul (no strided
    # slicing inside the kernel).
    rows = jax.lax.broadcasted_iota(jnp.int32, (pw, owt), 0)
    cols = jax.lax.broadcasted_iota(jnp.int32, (pw, owt), 1)
    sel_even = jnp.where(cols == 2 * rows, 1.0, 0.0).astype(jnp.bfloat16)
    sel_odd = jnp.where(cols == 2 * rows + 1, 1.0, 0.0).astype(jnp.bfloat16)

    def conv_row(r):
        # One full conv output row r: implicit GEMM over the k*k taps.
        acc = jnp.zeros((owt, cout), jnp.float32)
        for kh in range(k):
            for kw in range(k):
                a = x_ref[0, r + kh, pl.ds(kw, owt), :]          # (OWt, Cin) bf16
                acc = acc + jnp.dot(a, w_ref[kh * k + kw],
                                    preferred_element_type=jnp.float32)
        return jnp.maximum(acc + bias, 0.0)                      # bias + ReLU

    def body(p, carry):
        s_acc, ss_acc = carry
        mx = jnp.maximum(conv_row(2 * p), conv_row(2 * p + 1))   # pool over H
        mxb = mx.astype(jnp.bfloat16)
        pooled = jnp.maximum(                                    # pool over W
            jnp.dot(sel_even, mxb, preferred_element_type=jnp.float32),
            jnp.dot(sel_odd, mxb, preferred_element_type=jnp.float32))
        y_ref[0, p] = pooled.astype(jnp.bfloat16)
        s_acc = s_acc + jnp.sum(pooled, axis=0, keepdims=True)
        ss_acc = ss_acc + jnp.sum(pooled * pooled, axis=0, keepdims=True)
        return s_acc, ss_acc

    zeros = jnp.zeros((1, cout), jnp.float32)
    s_acc, ss_acc = jax.lax.fori_loop(0, ph, body, (zeros, zeros))
    stat_ref[0, 0:1, :] = s_acc
    stat_ref[0, 1:2, :] = ss_acc


def _head_kernel(x_ref, w4_ref, b4_ref, g4_ref, be4_ref,
                 w1_ref, b1_ref, g5_ref, be5_ref, mask_ref,
                 w2_ref, b2_ref, o_ref, *, eps, n_classes):
    """conv4(5x5, stride 5) + ReLU + 2x2 pool + bn4 + fc1 + ReLU + bn5 +
    dropout + fc2 + softmax, fused into one kernel (everything fits in VMEM).

    x_ref: (N, 12, 12, C3) bf16 un-normalized conv-block-3 output (bn3 is
    already folded into w4/b4).  o_ref: (N, 128) f32 class probabilities
    (columns >= n_classes are exactly zero)."""
    n = x_ref.shape[0]
    c4 = w4_ref.shape[-1]

    # conv4 at its four stride-5 output positions; 2x2 pool = max over positions
    # (ReLU and max commute, so ReLU is applied after the max).
    pos_max = None
    for oh in range(2):
        for ow in range(2):
            acc = jnp.zeros((n, c4), jnp.float32)
            for kh in range(5):
                for kw in range(5):
                    a = x_ref[:, oh * 5 + kh, ow * 5 + kw, :]    # (N, C3) bf16
                    acc = acc + jnp.dot(a, w4_ref[kh * 5 + kw],
                                        preferred_element_type=jnp.float32)
            pos_max = acc if pos_max is None else jnp.maximum(pos_max, acc)
    h = jnp.maximum(pos_max + b4_ref[...], 0.0)

    def batch_norm(v, g_ref, be_ref):            # training-mode, biased variance
        mean = jnp.mean(v, axis=0, keepdims=True)
        var = jnp.mean(jnp.square(v - mean), axis=0, keepdims=True)
        return (v - mean) * jax.lax.rsqrt(var + eps) * g_ref[...] + be_ref[...]

    h = batch_norm(h, g4_ref, be4_ref)                                  # bn4
    h = jnp.dot(h.astype(jnp.bfloat16), w1_ref[...],
                preferred_element_type=jnp.float32) + b1_ref[...]       # fc1
    h = jnp.maximum(h, 0.0)
    h = batch_norm(h, g5_ref, be5_ref)                                  # bn5
    h = h * mask_ref[...]                                               # dropout
    logits = jnp.dot(h.astype(jnp.bfloat16), w2_ref[...],
                     preferred_element_type=jnp.float32) + b2_ref[...]  # fc2
    col = jax.lax.broadcasted_iota(jnp.int32, logits.shape, 1)
    logits = jnp.where(col < n_classes, logits, -1e30)     # mask padded classes
    m = jnp.max(logits, axis=1, keepdims=True)              # softmax (dim=1)
    e = jnp.exp(logits - m)
    o_ref[...] = e / jnp.sum(e, axis=1, keepdims=True)


# -----------------------------------------------------------------------------
# Pallas wrappers
# -----------------------------------------------------------------------------

def _conv_block(x, w_bf16, bias_f32, *, k):
    """relu(conv_k(x) + b) -> 2x2/2 max-pool, plus per-image BN statistics."""
    n, h, wd, cin = x.shape
    cout = w_bf16.shape[-1]
    ph, pw = (h - k + 1) // 2, (wd - k + 1) // 2
    return pl.pallas_call(
        functools.partial(_conv_block_kernel, k=k),
        grid=(n,),
        in_specs=[
            pl.BlockSpec((1, h, wd, cin), lambda i: (i, 0, 0, 0)),
            pl.BlockSpec((k * k, cin, cout), lambda i: (0, 0, 0)),
            pl.BlockSpec((1, cout), lambda i: (0, 0)),
        ],
        out_specs=(
            pl.BlockSpec((1, ph, pw, cout), lambda i: (i, 0, 0, 0)),
            pl.BlockSpec((1, 2, cout), lambda i: (i, 0, 0)),
        ),
        out_shape=(
            jax.ShapeDtypeStruct((n, ph, pw, cout), jnp.bfloat16),
            jax.ShapeDtypeStruct((n, 2, cout), jnp.float32),
        ),
        compiler_params=pltpu.CompilerParams(dimension_semantics=("parallel",)),
    )(x, w_bf16, bias_f32)


def _head(x3, w4, b4, g4, be4, w1, b1, g5, be5, mask, w2, b2, *, eps=1e-5):
    n = x3.shape[0]
    n_cls_pad = w2.shape[-1]
    vmem = pl.BlockSpec(memory_space=pltpu.MemorySpace.VMEM)
    args = (x3, w4, b4.reshape(1, -1), g4.reshape(1, -1), be4.reshape(1, -1),
            w1, b1.reshape(1, -1), g5.reshape(1, -1), be5.reshape(1, -1),
            mask, w2, b2.reshape(1, -1))
    return pl.pallas_call(
        functools.partial(_head_kernel, eps=eps, n_classes=25),
        out_shape=jax.ShapeDtypeStruct((n, n_cls_pad), jnp.float32),
        in_specs=[vmem] * len(args),
        out_specs=vmem,
    )(*args)


# -----------------------------------------------------------------------------
# Plain-JAX glue: BN folding, parameters, forward
# -----------------------------------------------------------------------------

def _bn_scale_shift(stats, gamma, beta, count, eps=1e-5):
    """Training-mode BatchNorm (biased variance) as a per-channel affine."""
    total = jnp.sum(stats.astype(jnp.float32), axis=0)        # (2, C)
    mean = total[0] / count
    var = jnp.maximum(total[1] / count - mean * mean, 0.0)
    scale = gamma * jax.lax.rsqrt(var + eps)
    shift = beta - mean * scale
    return scale, shift


def _fold_bn_into_conv(w_master, b_master, scale, shift):
    """Fold a per-input-channel affine (previous block's BN) into conv weights."""
    wf = w_master * scale[None, :, None]
    bf = b_master + jnp.einsum("kio,i->o", w_master, shift)
    return wf.astype(jnp.bfloat16), bf.reshape(1, -1).astype(jnp.float32)


def _init_params(key):
    """Deterministic synthetic parameters with the module's shapes (no ckpt).
    Channel dims are zero-padded to multiples of 128 for lane-dense layouts."""
    conv_defs = [  # (cout, cin, k, cin_pad, cout_pad) for conv1..conv4
        (50, 3, 3, 3, 128),
        (90, 50, 6, 128, 128),
        (120, 90, 5, 128, 128),
        (250, 120, 5, 128, 256),
    ]
    params = {"conv": []}
    for cout, cin, k, cin_pad, cout_pad in conv_defs:
        key, kw_, kb_ = jax.random.split(key, 3)
        fan_in = cin * k * k
        w = jax.random.normal(kw_, (cout, cin, k, k), jnp.float32) / (fan_in ** 0.5)
        b = jax.random.normal(kb_, (cout,), jnp.float32) * 0.01
        # torch layout (cout, cin, kh, kw) -> kernel layout (kh*kw, cin, cout)
        w_km = jnp.transpose(w, (2, 3, 1, 0)).reshape(k * k, cin, cout)
        w_pad = jnp.zeros((k * k, cin_pad, cout_pad), jnp.float32)
        w_pad = w_pad.at[:, :cin, :cout].set(w_km)
        b_pad = jnp.zeros((cout_pad,), jnp.float32).at[:cout].set(b)
        params["conv"].append(dict(
            w=w_pad, b=b_pad, k=k,
            gamma=jnp.ones((cout_pad,), jnp.float32),
            beta=jnp.zeros((cout_pad,), jnp.float32)))
    key, k1, k2, k3, k4 = jax.random.split(key, 5)
    w1 = jax.random.normal(k1, (80, 250), jnp.float32) / (250.0 ** 0.5)
    b1 = jax.random.normal(k2, (80,), jnp.float32) * 0.01
    w2 = jax.random.normal(k3, (25, 80), jnp.float32) / (80.0 ** 0.5)
    b2 = jax.random.normal(k4, (25,), jnp.float32) * 0.01
    params["fc1"] = dict(                       # torch Linear weight is (out, in)
        w=jnp.zeros((256, 128), jnp.float32).at[:250, :80].set(w1.T),
        b=jnp.zeros((128,), jnp.float32).at[:80].set(b1))
    params["bn5"] = dict(gamma=jnp.ones((128,), jnp.float32),
                         beta=jnp.zeros((128,), jnp.float32))
    params["fc2"] = dict(
        w=jnp.zeros((128, 128), jnp.float32).at[:80, :25].set(w2.T),
        b=jnp.zeros((128,), jnp.float32).at[:25].set(b2))
    return params


def net_forward(params, x_nchw, dropout_key, *, eps=1e-5, drop_p=0.5):
    """Forward pass of `Net`: x_nchw (N, 3, 128, 128) -> probabilities (N, 25)."""
    n = x_nchw.shape[0]
    x = jnp.transpose(x_nchw, (0, 2, 3, 1)).astype(jnp.bfloat16)   # NCHW -> NHWC

    convs = params["conv"]
    # Conv block 1 (no preceding BN to fold).
    c = convs[0]
    y, st = _conv_block(x, c["w"].astype(jnp.bfloat16),
                        c["b"].reshape(1, -1), k=c["k"])
    scale, shift = _bn_scale_shift(st, c["gamma"], c["beta"],
                                   n * y.shape[1] * y.shape[2], eps=eps)
    # Conv blocks 2 and 3: previous block's BN folded into this block's conv.
    for c in convs[1:3]:
        wf, bf = _fold_bn_into_conv(c["w"], c["b"], scale, shift)
        y, st = _conv_block(y, wf, bf, k=c["k"])
        scale, shift = _bn_scale_shift(st, c["gamma"], c["beta"],
                                       n * y.shape[1] * y.shape[2], eps=eps)

    # Head: bn3 folded into conv4; conv4/pool/bn4/fc1/bn5/dropout/fc2/softmax fused.
    c4 = convs[3]
    w4, b4 = _fold_bn_into_conv(c4["w"], c4["b"], scale, shift)
    # Dropout(p=0.5), training mode, pre-scaled keep mask drawn on the host side.
    # TODO(synk): uses jax.random, cannot bit-match torch's RNG stream.
    keep = jax.random.bernoulli(dropout_key, 1.0 - drop_p,
                                (n, params["fc1"]["w"].shape[1]))
    mask = keep.astype(jnp.float32) / (1.0 - drop_p)
    # TODO(synk): torch applies nn.BatchNorm2d(80) to a 2-D (N, 80) tensor (which
    # BatchNorm2d rejects); bn5 is implemented with BatchNorm1d-style semantics.
    probs = _head(y, w4, b4, c4["gamma"], c4["beta"],
                  params["fc1"]["w"].astype(jnp.bfloat16), params["fc1"]["b"],
                  params["bn5"]["gamma"], params["bn5"]["beta"], mask,
                  params["fc2"]["w"].astype(jnp.bfloat16), params["fc2"]["b"],
                  eps=eps)
    return probs[:, :25]


if __name__ == "__main__":
    key = jax.random.PRNGKey(0)
    kx, kp, kd = jax.random.split(key, 3)
    # batch=2 so training-mode batch statistics are well defined; spatial 128 is
    # what the conv stack implies (x.view(-1, 250) needs the 1x1x250 map it yields).
    x = jax.random.normal(kx, (2, 3, 128, 128), jnp.float32)
    params = _init_params(kp)

    out = net_forward(params, x, kd)
    out = jax.block_until_ready(out)

    assert out.shape == (2, 25), out.shape
    assert bool(jnp.all(jnp.isfinite(out)))
    assert bool(jnp.allclose(jnp.sum(out, axis=1), 1.0, atol=1e-3))  # softmax rows
    print("KERNEL_OK")
</pallas_src>

<mosaic_0001>
module attributes {stable_mosaic.version = 11 : i64} {
  func.func @_conv_block_kernel(%arg0: i32, %arg1: memref<1x128x128x3xbf16, #tpu.memory_space<vmem>>, %arg2: memref<9x3x128xbf16, #tpu.memory_space<vmem>>, %arg3: memref<1x128xf32, #tpu.memory_space<vmem>>, %arg4: memref<1x63x63x128xbf16, #tpu.memory_space<vmem>>, %arg5: memref<1x2x128xf32, #tpu.memory_space<vmem>>) attributes {dimension_semantics = [#tpu.dimension_semantics<parallel>], iteration_bounds = array<i64: 2>, scalar_prefetch = 0 : i64, scratch_operands = 0 : i64, tpu.core_type = #tpu.core_type<tc>, window_params = [{transform_indices = @transform_0, window_bounds = array<i64: 1, 128, 128, 3>}, {pipeline_mode = #tpu.pipeline_mode<synchronous>, transform_indices = @transform_1, window_bounds = array<i64: 9, 3, 128>}, {pipeline_mode = #tpu.pipeline_mode<synchronous>, transform_indices = @transform_2, window_bounds = array<i64: 1, 128>}, {transform_indices = @transform_3, window_bounds = array<i64: 1, 63, 63, 128>}, {transform_indices = @transform_4, window_bounds = array<i64: 1, 2, 128>}]} {
    %c0 = arith.constant 0 : index
    %c0_0 = arith.constant 0 : index
    %0 = vector.load %arg3[%c0, %c0_0] : memref<1x128xf32, #tpu.memory_space<vmem>>, vector<1x128xf32>
    %1 = tpu.iota {dimensions = array<i32: 0>} : vector<63x126xi32>
    %2 = tpu.iota {dimensions = array<i32: 1>} : vector<63x126xi32>
    %c2_i32 = arith.constant 2 : i32
    %3 = vector.broadcast %c2_i32 : i32 to vector<63x126xi32>
    %4 = arith.muli %3, %1 : vector<63x126xi32>
    %5 = arith.cmpi eq, %2, %4 : vector<63x126xi32>
    %cst = arith.constant 1.000000e+00 : f32
    %cst_1 = arith.constant 0.000000e+00 : f32
    %6 = vector.broadcast %cst : f32 to vector<63x126xf32>
    %7 = vector.broadcast %cst_1 : f32 to vector<63x126xf32>
    %8 = arith.select %5, %6, %7 : vector<63x126xi1>, vector<63x126xf32>
    %9 = arith.truncf %8 : vector<63x126xf32> to vector<63x126xbf16>
    %c2_i32_2 = arith.constant 2 : i32
    %10 = vector.broadcast %c2_i32_2 : i32 to vector<63x126xi32>
    %11 = arith.muli %10, %1 : vector<63x126xi32>
    %c1_i32 = arith.constant 1 : i32
    %12 = vector.broadcast %c1_i32 : i32 to vector<63x126xi32>
    %13 = arith.addi %11, %12 : vector<63x126xi32>
    %14 = arith.cmpi eq, %2, %13 : vector<63x126xi32>
    %cst_3 = arith.constant 1.000000e+00 : f32
    %cst_4 = arith.constant 0.000000e+00 : f32
    %15 = vector.broadcast %cst_3 : f32 to vector<63x126xf32>
    %16 = vector.broadcast %cst_4 : f32 to vector<63x126xf32>
    %17 = arith.select %14, %15, %16 : vector<63x126xi1>, vector<63x126xf32>
    %18 = arith.truncf %17 : vector<63x126xf32> to vector<63x126xbf16>
    %cst_5 = arith.constant 0.000000e+00 : f32
    %19 = vector.broadcast %cst_5 : f32 to vector<1x128xf32>
    %c0_i32 = arith.constant 0 : i32
    %c63_i32 = arith.constant 63 : i32
    %20 = arith.addi %c0_i32, %c63_i32 : i32
    %c1_i32_6 = arith.constant 1 : i32
    %21:2 = scf.for %arg6 = %c0_i32 to %20 step %c1_i32_6 iter_args(%arg7 = %19, %arg8 = %19) -> (vector<1x128xf32>, vector<1x128xf32>)  : i32 {
      %c2_i32_13 = arith.constant 2 : i32
      %28 = arith.muli %c2_i32_13, %arg6 : i32
      %cst_14 = arith.constant 0.000000e+00 : f32
      %29 = vector.broadcast %cst_14 : f32 to vector<126x128xf32>
      %c0_i32_15 = arith.constant 0 : i32
      %30 = arith.addi %28, %c0_i32_15 : i32
      %c0_16 = arith.constant 0 : index
      %31 = arith.index_cast %30 : i32 to index
      %c0_17 = arith.constant 0 : index
      %c0_18 = arith.constant 0 : index
      %32 = vector.load %arg1[%c0_16, %31, %c0_17, %c0_18] : memref<1x128x128x3xbf16, #tpu.memory_space<vmem>>, vector<1x1x126x3xbf16>
      %33 = vector.shape_cast %32 : vector<1x1x126x3xbf16> to vector<126x3xbf16>
      %c0_19 = arith.constant 0 : index
      %c0_20 = arith.constant 0 : index
      %c0_21 = arith.constant 0 : index
      %34 = vector.load %arg2[%c0_19, %c0_20, %c0_21] : memref<9x3x128xbf16, #tpu.memory_space<vmem>>, vector<1x3x128xbf16>
      %35 = vector.shape_cast %34 : vector<1x3x128xbf16> to vector<3x128xbf16>
      %cst_22 = arith.constant dense<0.000000e+00> : vector<126x128xf32>
      %36 = tpu.matmul %33, %35, %cst_22 {dimension_numbers = #tpu.dot_dimension_numbers<[1], [0], [0], [1], [0, 0, 1, 1], [], []>} : vector<126x3xbf16>, vector<3x128xbf16>, vector<126x128xf32> -> vector<126x128xf32>
      %37 = arith.addf %29, %36 : vector<126x128xf32>
      %c0_i32_23 = arith.constant 0 : i32
      %38 = arith.addi %28, %c0_i32_23 : i32
      %c0_24 = arith.constant 0 : index
      %39 = arith.index_cast %38 : i32 to index
      %c1_25 = arith.constant 1 : index
      %c0_26 = arith.constant 0 : index
      %40 = vector.load %arg1[%c0_24, %39, %c1_25, %c0_26] : memref<1x128x128x3xbf16, #tpu.memory_space<vmem>>, vector<1x1x126x3xbf16>
      %41 = vector.shape_cast %40 : vector<1x1x126x3xbf16> to vector<126x3xbf16>
      %c1_27 = arith.constant 1 : index
      %c0_28 = arith.constant 0 : index
      %c0_29 = arith.constant 0 : index
      %42 = vector.load %arg2[%c1_27, %c0_28, %c0_29] : memref<9x3x128xbf16, #tpu.memory_space<vmem>>, vector<1x3x128xbf16>
      %43 = vector.shape_cast %42 : vector<1x3x128xbf16> to vector<3x128xbf16>
      %cst_30 = arith.constant dense<0.000000e+00> : vector<126x128xf32>
      %44 = tpu.matmul %41, %43, %cst_30 {dimension_numbers = #tpu.dot_dimension_numbers<[1], [0], [0], [1], [0, 0, 1, 1], [], []>} : vector<126x3xbf16>, vector<3x128xbf16>, vector<126x128xf32> -> vector<126x128xf32>
      %45 = arith.addf %37, %44 : vector<126x128xf32>
      %c0_i32_31 = arith.constant 0 : i32
      %46 = arith.addi %28, %c0_i32_31 : i32
      %c0_32 = arith.constant 0 : index
      %47 = arith.index_cast %46 : i32 to index
      %c2 = arith.constant 2 : index
      %c0_33 = arith.constant 0 : index
      %48 = vector.load %arg1[%c0_32, %47, %c2, %c0_33] : memref<1x128x128x3xbf16, #tpu.memory_space<vmem>>, vector<1x1x126x3xbf16>
      %49 = vector.shape_cast %48 : vector<1x1x126x3xbf16> to vector<126x3xbf16>
      %c2_34 = arith.constant 2 : index
      %c0_35 = arith.constant 0 : index
      %c0_36 = arith.constant 0 : index
      %50 = vector.load %arg2[%c2_34, %c0_35, %c0_36] : memref<9x3x128xbf16, #tpu.memory_space<vmem>>, vector<1x3x128xbf16>
      %51 = vector.shape_cast %50 : vector<1x3x128xbf16> to vector<3x128xbf16>
      %cst_37 = arith.constant dense<0.000000e+00> : vector<126x128xf32>
      %52 = tpu.matmul %49, %51, %cst_37 {dimension_numbers = #tpu.dot_dimension_numbers<[1], [0], [0], [1], [0, 0, 1, 1], [], []>} : vector<126x3xbf16>, vector<3x128xbf16>, vector<126x128xf32> -> vector<126x128xf32>
      %53 = arith.addf %45, %52 : vector<126x128xf32>
      %c1_i32_38 = arith.constant 1 : i32
      %54 = arith.addi %28, %c1_i32_38 : i32
      %c0_39 = arith.constant 0 : index
      %55 = arith.index_cast %54 : i32 to index
      %c0_40 = arith.constant 0 : index
      %c0_41 = arith.constant 0 : index
      %56 = vector.load %arg1[%c0_39, %55, %c0_40, %c0_41] : memref<1x128x128x3xbf16, #tpu.memory_space<vmem>>, vector<1x1x126x3xbf16>
      %57 = vector.shape_cast %56 : vector<1x1x126x3xbf16> to vector<126x3xbf16>
      %c3 = arith.constant 3 : index
      %c0_42 = arith.constant 0 : index
      %c0_43 = arith.constant 0 : index
      %58 = vector.load %arg2[%c3, %c0_42, %c0_43] : memref<9x3x128xbf16, #tpu.memory_space<vmem>>, vector<1x3x128xbf16>
      %59 = vector.shape_cast %58 : vector<1x3x128xbf16> to vector<3x128xbf16>
      %cst_44 = arith.constant dense<0.000000e+00> : vector<126x128xf32>
      %60 = tpu.matmul %57, %59, %cst_44 {dimension_numbers = #tpu.dot_dimension_numbers<[1], [0], [0], [1], [0, 0, 1, 1], [], []>} : vector<126x3xbf16>, vector<3x128xbf16>, vector<126x128xf32> -> vector<126x128xf32>
      %61 = arith.addf %53, %60 : vector<126x128xf32>
      %c1_i32_45 = arith.constant 1 : i32
      %62 = arith.addi %28, %c1_i32_45 : i32
      %c0_46 = arith.constant 0 : index
      %63 = arith.index_cast %62 : i32 to index
      %c1_47 = arith.constant 1 : index
      %c0_48 = arith.constant 0 : index
      %64 = vector.load %arg1[%c0_46, %63, %c1_47, %c0_48] : memref<1x128x128x3xbf16, #tpu.memory_space<vmem>>, vector<1x1x126x3xbf16>
      %65 = vector.shape_cast %64 : vector<1x1x126x3xbf16> to vector<126x3xbf16>
      %c4 = arith.constant 4 : index
      %c0_49 = arith.constant 0 : index
      %c0_50 = arith.constant 0 : index
      %66 = vector.load %arg2[%c4, %c0_49, %c0_50] : memref<9x3x128xbf16, #tpu.memory_space<vmem>>, vector<1x3x128xbf16>
      %67 = vector.shape_cast %66 : vector<1x3x128xbf16> to vector<3x128xbf16>
      %cst_51 = arith.constant dense<0.000000e+00> : vector<126x128xf32>
      %68 = tpu.matmul %65, %67, %cst_51 {dimension_numbers = #tpu.dot_dimension_numbers<[1], [0], [0], [1], [0, 0, 1, 1], [], []>} : vector<126x3xbf16>, vector<3x128xbf16>, vector<126x128xf32> -> vector<126x128xf32>
      %69 = arith.addf %61, %68 : vector<126x128xf32>
      %c1_i32_52 = arith.constant 1 : i32
      %70 = arith.addi %28, %c1_i32_52 : i32
      %c0_53 = arith.constant 0 : index
      %71 = arith.index_cast %70 : i32 to index
      %c2_54 = arith.constant 2 : index
      %c0_55 = arith.constant 0 : index
      %72 = vector.load %arg1[%c0_53, %71, %c2_54, %c0_55] : memref<1x128x128x3xbf16, #tpu.memory_space<vmem>>, vector<1x1x126x3xbf16>
      %73 = vector.shape_cast %72 : vector<1x1x126x3xbf16> to vector<126x3xbf16>
      %c5 = arith.constant 5 : index
      %c0_56 = arith.constant 0 : index
      %c0_57 = arith.constant 0 : index
      %74 = vector.load %arg2[%c5, %c0_56, %c0_57] : memref<9x3x128xbf16, #tpu.memory_space<vmem>>, vector<1x3x128xbf16>
      %75 = vector.shape_cast %74 : vector<1x3x128xbf16> to vector<3x128xbf16>
      %cst_58 = arith.constant dense<0.000000e+00> : vector<126x128xf32>
      %76 = tpu.matmul %73, %75, %cst_58 {dimension_numbers = #tpu.dot_dimension_numbers<[1], [0], [0], [1], [0, 0, 1, 1], [], []>} : vector<126x3xbf16>, vector<3x128xbf16>, vector<126x128xf32> -> vector<126x128xf32>
      %77 = arith.addf %69, %76 : vector<126x128xf32>
      %c2_i32_59 = arith.constant 2 : i32
      %78 = arith.addi %28, %c2_i32_59 : i32
      %c0_60 = arith.constant 0 : index
      %79 = arith.index_cast %78 : i32 to index
      %c0_61 = arith.constant 0 : index
      %c0_62 = arith.constant 0 : index
      %80 = vector.load %arg1[%c0_60, %79, %c0_61, %c0_62] : memref<1x128x128x3xbf16, #tpu.memory_space<vmem>>, vector<1x1x126x3xbf16>
      %81 = vector.shape_cast %80 : vector<1x1x126x3xbf16> to vector<126x3xbf16>
      %c6 = arith.constant 6 : index
      %c0_63 = arith.constant 0 : index
      %c0_64 = arith.constant 0 : index
      %82 = vector.load %arg2[%c6, %c0_63, %c0_64] : memref<9x3x128xbf16, #tpu.memory_space<vmem>>, vector<1x3x128xbf16>
      %83 = vector.shape_cast %82 : vector<1x3x128xbf16> to vector<3x128xbf16>
      %cst_65 = arith.constant dense<0.000000e+00> : vector<126x128xf32>
      %84 = tpu.matmul %81, %83, %cst_65 {dimension_numbers = #tpu.dot_dimension_numbers<[1], [0], [0], [1], [0, 0, 1, 1], [], []>} : vector<126x3xbf16>, vector<3x128xbf16>, vector<126x128xf32> -> vector<126x128xf32>
      %85 = arith.addf %77, %84 : vector<126x128xf32>
      %c2_i32_66 = arith.constant 2 : i32
      %86 = arith.addi %28, %c2_i32_66 : i32
      %c0_67 = arith.constant 0 : index
      %87 = arith.index_cast %86 : i32 to index
      %c1_68 = arith.constant 1 : index
      %c0_69 = arith.constant 0 : index
      %88 = vector.load %arg1[%c0_67, %87, %c1_68, %c0_69] : memref<1x128x128x3xbf16, #tpu.memory_space<vmem>>, vector<1x1x126x3xbf16>
      %89 = vector.shape_cast %88 : vector<1x1x126x3xbf16> to vector<126x3xbf16>
      %c7 = arith.constant 7 : index
      %c0_70 = arith.constant 0 : index
      %c0_71 = arith.constant 0 : index
      %90 = vector.load %arg2[%c7, %c0_70, %c0_71] : memref<9x3x128xbf16, #tpu.memory_space<vmem>>, vector<1x3x128xbf16>
      %91 = vector.shape_cast %90 : vector<1x3x128xbf16> to vector<3x128xbf16>
      %cst_72 = arith.constant dense<0.000000e+00> : vector<126x128xf32>
      %92 = tpu.matmul %89, %91, %cst_72 {dimension_numbers = #tpu.dot_dimension_numbers<[1], [0], [0], [1], [0, 0, 1, 1], [], []>} : vector<126x3xbf16>, vector<3x128xbf16>, vector<126x128xf32> -> vector<126x128xf32>
      %93 = arith.addf %85, %92 : vector<126x128xf32>
      %c2_i32_73 = arith.constant 2 : i32
      %94 = arith.addi %28, %c2_i32_73 : i32
      %c0_74 = arith.constant 0 : index
      %95 = arith.index_cast %94 : i32 to index
      %c2_75 = arith.constant 2 : index
      %c0_76 = arith.constant 0 : index
      %96 = vector.load %arg1[%c0_74, %95, %c2_75, %c0_76] : memref<1x128x128x3xbf16, #tpu.memory_space<vmem>>, vector<1x1x126x3xbf16>
      %97 = vector.shape_cast %96 : vector<1x1x126x3xbf16> to vector<126x3xbf16>
      %c8 = arith.constant 8 : index
      %c0_77 = arith.constant 0 : index
      %c0_78 = arith.constant 0 : index
      %98 = vector.load %arg2[%c8, %c0_77, %c0_78] : memref<9x3x128xbf16, #tpu.memory_space<vmem>>, vector<1x3x128xbf16>
      %99 = vector.shape_cast %98 : vector<1x3x128xbf16> to vector<3x128xbf16>
      %cst_79 = arith.constant dense<0.000000e+00> : vector<126x128xf32>
      %100 = tpu.matmul %97, %99, %cst_79 {dimension_numbers = #tpu.dot_dimension_numbers<[1], [0], [0], [1], [0, 0, 1, 1], [], []>} : vector<126x3xbf16>, vector<3x128xbf16>, vector<126x128xf32> -> vector<126x128xf32>
      %101 = arith.addf %93, %100 : vector<126x128xf32>
      %102 = vector.broadcast %0 : vector<1x128xf32> to vector<126x128xf32>
      %103 = arith.addf %101, %102 : vector<126x128xf32>
      %cst_80 = arith.constant 0.000000e+00 : f32
      %104 = vector.broadcast %cst_80 : f32 to vector<126x128xf32>
      %105 = arith.maximumf %103, %104 : vector<126x128xf32>
      %c2_i32_81 = arith.constant 2 : i32
      %106 = arith.muli %c2_i32_81, %arg6 : i32
      %c1_i32_82 = arith.constant 1 : i32
      %107 = arith.addi %106, %c1_i32_82 : i32
      %cst_83 = arith.constant 0.000000e+00 : f32
      %108 = vector.broadcast %cst_83 : f32 to vector<126x128xf32>
      %c0_i32_84 = arith.constant 0 : i32
      %109 = arith.addi %107, %c0_i32_84 : i32
      %c0_85 = arith.constant 0 : index
      %110 = arith.index_cast %109 : i32 to index
      %c0_86 = arith.constant 0 : index
      %c0_87 = arith.constant 0 : index
      %111 = vector.load %arg1[%c0_85, %110, %c0_86, %c0_87] : memref<1x128x128x3xbf16, #tpu.memory_space<vmem>>, vector<1x1x126x3xbf16>
      %112 = vector.shape_cast %111 : vector<1x1x126x3xbf16> to vector<126x3xbf16>
      %c0_88 = arith.constant 0 : index
      %c0_89 = arith.constant 0 : index
      %c0_90 = arith.constant 0 : index
      %113 = vector.load %arg2[%c0_88, %c0_89, %c0_90] : memref<9x3x128xbf16, #tpu.memory_space<vmem>>, vector<1x3x128xbf16>
      %114 = vector.shape_cast %113 : vector<1x3x128xbf16> to vector<3x128xbf16>
      %cst_91 = arith.constant dense<0.000000e+00> : vector<126x128xf32>
      %115 = tpu.matmul %112, %114, %cst_91 {dimension_numbers = #tpu.dot_dimension_numbers<[1], [0], [0], [1], [0, 0, 1, 1], [], []>} : vector<126x3xbf16>, vector<3x128xbf16>, vector<126x128xf32> -> vector<126x128xf32>
      %116 = arith.addf %108, %115 : vector<126x128xf32>
      %c0_i32_92 = arith.constant 0 : i32
      %117 = arith.addi %107, %c0_i32_92 : i32
      %c0_93 = arith.constant 0 : index
      %118 = arith.index_cast %117 : i32 to index
      %c1_94 = arith.constant 1 : index
      %c0_95 = arith.constant 0 : index
      %119 = vector.load %arg1[%c0_93, %118, %c1_94, %c0_95] : memref<1x128x128x3xbf16, #tpu.memory_space<vmem>>, vector<1x1x126x3xbf16>
      %120 = vector.shape_cast %119 : vector<1x1x126x3xbf16> to vector<126x3xbf16>
      %c1_96 = arith.constant 1 : index
      %c0_97 = arith.constant 0 : index
      %c0_98 = arith.constant 0 : index
      %121 = vector.load %arg2[%c1_96, %c0_97, %c0_98] : memref<9x3x128xbf16, #tpu.memory_space<vmem>>, vector<1x3x128xbf16>
      %122 = vector.shape_cast %121 : vector<1x3x128xbf16> to vector<3x128xbf16>
      %cst_99 = arith.constant dense<0.000000e+00> : vector<126x128xf32>
      %123 = tpu.matmul %120, %122, %cst_99 {dimension_numbers = #tpu.dot_dimension_numbers<[1], [0], [0], [1], [0, 0, 1, 1], [], []>} : vector<126x3xbf16>, vector<3x128xbf16>, vector<126x128xf32> -> vector<126x128xf32>
      %124 = arith.addf %116, %123 : vector<126x128xf32>
      %c0_i32_100 = arith.constant 0 : i32
      %125 = arith.addi %107, %c0_i32_100 : i32
      %c0_101 = arith.constant 0 : index
      %126 = arith.index_cast %125 : i32 to index
      %c2_102 = arith.constant 2 : index
      %c0_103 = arith.constant 0 : index
      %127 = vector.load %arg1[%c0_101, %126, %c2_102, %c0_103] : memref<1x128x128x3xbf16, #tpu.memory_space<vmem>>, vector<1x1x126x3xbf16>
      %128 = vector.shape_cast %127 : vector<1x1x126x3xbf16> to vector<126x3xbf16>
      %c2_104 = arith.constant 2 : index
      %c0_105 = arith.constant 0 : index
      %c0_106 = arith.constant 0 : index
      %129 = vector.load %arg2[%c2_104, %c0_105, %c0_106] : memref<9x3x128xbf16, #tpu.memory_space<vmem>>, vector<1x3x128xbf16>
      %130 = vector.shape_cast %129 : vector<1x3x128xbf16> to vector<3x128xbf16>
      %cst_107 = arith.constant dense<0.000000e+00> : vector<126x128xf32>
      %131 = tpu.matmul %128, %130, %cst_107 {dimension_numbers = #tpu.dot_dimension_numbers<[1], [0], [0], [1], [0, 0, 1, 1], [], []>} : vector<126x3xbf16>, vector<3x128xbf16>, vector<126x128xf32> -> vector<126x128xf32>
      %132 = arith.addf %124, %131 : vector<126x128xf32>
      %c1_i32_108 = arith.constant 1 : i32
      %133 = arith.addi %107, %c1_i32_108 : i32
      %c0_109 = arith.constant 0 : index
      %134 = arith.index_cast %133 : i32 to index
      %c0_110 = arith.constant 0 : index
      %c0_111 = arith.constant 0 : index
      %135 = vector.load %arg1[%c0_109, %134, %c0_110, %c0_111] : memref<1x128x128x3xbf16, #tpu.memory_space<vmem>>, vector<1x1x126x3xbf16>
      %136 = vector.shape_cast %135 : vector<1x1x126x3xbf16> to vector<126x3xbf16>
      %c3_112 = arith.constant 3 : index
      %c0_113 = arith.constant 0 : index
      %c0_114 = arith.constant 0 : index
      %137 = vector.load %arg2[%c3_112, %c0_113, %c0_114] : memref<9x3x128xbf16, #tpu.memory_space<vmem>>, vector<1x3x128xbf16>
      %138 = vector.shape_cast %137 : vector<1x3x128xbf16> to vector<3x128xbf16>
      %cst_115 = arith.constant dense<0.000000e+00> : vector<126x128xf32>
      %139 = tpu.matmul %136, %138, %cst_115 {dimension_numbers = #tpu.dot_dimension_numbers<[1], [0], [0], [1], [0, 0, 1, 1], [], []>} : vector<126x3xbf16>, vector<3x128xbf16>, vector<126x128xf32> -> vector<126x128xf32>
      %140 = arith.addf %132, %139 : vector<126x128xf32>
      %c1_i32_116 = arith.constant 1 : i32
      %141 = arith.addi %107, %c1_i32_116 : i32
      %c0_117 = arith.constant 0 : index
      %142 = arith.index_cast %141 : i32 to index
      %c1_118 = arith.constant 1 : index
      %c0_119 = arith.constant 0 : index
      %143 = vector.load %arg1[%c0_117, %142, %c1_118, %c0_119] : memref<1x128x128x3xbf16, #tpu.memory_space<vmem>>, vector<1x1x126x3xbf16>
      %144 = vector.shape_cast %143 : vector<1x1x126x3xbf16> to vector<126x3xbf16>
      %c4_120 = arith.constant 4 : index
      %c0_121 = arith.constant 0 : index
      %c0_122 = arith.constant 0 : index
      %145 = vector.load %arg2[%c4_120, %c0_121, %c0_122] : memref<9x3x128xbf16, #tpu.memory_space<vmem>>, vector<1x3x128xbf16>
      %146 = vector.shape_cast %145 : vector<1x3x128xbf16> to vector<3x128xbf16>
      %cst_123 = arith.constant dense<0.000000e+00> : vector<126x128xf32>
      %147 = tpu.matmul %144, %146, %cst_123 {dimension_numbers = #tpu.dot_dimension_numbers<[1], [0], [0], [1], [0, 0, 1, 1], [], []>} : vector<126x3xbf16>, vector<3x128xbf16>, vector<126x128xf32> -> vector<126x128xf32>
      %148 = arith.addf %140, %147 : vector<126x128xf32>
      %c1_i32_124 = arith.constant 1 : i32
      %149 = arith.addi %107, %c1_i32_124 : i32
      %c0_125 = arith.constant 0 : index
      %150 = arith.index_cast %149 : i32 to index
      %c2_126 = arith.constant 2 : index
      %c0_127 = arith.constant 0 : index
      %151 = vector.load %arg1[%c0_125, %150, %c2_126, %c0_127] : memref<1x128x128x3xbf16, #tpu.memory_space<vmem>>, vector<1x1x126x3xbf16>
      %152 = vector.shape_cast %151 : vector<1x1x126x3xbf16> to vector<126x3xbf16>
      %c5_128 = arith.constant 5 : index
      %c0_129 = arith.constant 0 : index
      %c0_130 = arith.constant 0 : index
      %153 = vector.load %arg2[%c5_128, %c0_129, %c0_130] : memref<9x3x128xbf16, #tpu.memory_space<vmem>>, vector<1x3x128xbf16>
      %154 = vector.shape_cast %153 : vector<1x3x128xbf16> to vector<3x128xbf16>
      %cst_131 = arith.constant dense<0.000000e+00> : vector<126x128xf32>
      %155 = tpu.matmul %152, %154, %cst_131 {dimension_numbers = #tpu.dot_dimension_numbers<[1], [0], [0], [1], [0, 0, 1, 1], [], []>} : vector<126x3xbf16>, vector<3x128xbf16>, vector<126x128xf32> -> vector<126x128xf32>
      %156 = arith.addf %148, %155 : vector<126x128xf32>
      %c2_i32_132 = arith.constant 2 : i32
      %157 = arith.addi %107, %c2_i32_132 : i32
      %c0_133 = arith.constant 0 : index
      %158 = arith.index_cast %157 : i32 to index
      %c0_134 = arith.constant 0 : index
      %c0_135 = arith.constant 0 : index
      %159 = vector.load %arg1[%c0_133, %158, %c0_134, %c0_135] : memref<1x128x128x3xbf16, #tpu.memory_space<vmem>>, vector<1x1x126x3xbf16>
      %160 = vector.shape_cast %159 : vector<1x1x126x3xbf16> to vector<126x3xbf16>
      %c6_136 = arith.constant 6 : index
      %c0_137 = arith.constant 0 : index
      %c0_138 = arith.constant 0 : index
      %161 = vector.load %arg2[%c6_136, %c0_137, %c0_138] : memref<9x3x128xbf16, #tpu.memory_space<vmem>>, vector<1x3x128xbf16>
      %162 = vector.shape_cast %161 : vector<1x3x128xbf16> to vector<3x128xbf16>
      %cst_139 = arith.constant dense<0.000000e+00> : vector<126x128xf32>
      %163 = tpu.matmul %160, %162, %cst_139 {dimension_numbers = #tpu.dot_dimension_numbers<[1], [0], [0], [1], [0, 0, 1, 1], [], []>} : vector<126x3xbf16>, vector<3x128xbf16>, vector<126x128xf32> -> vector<126x128xf32>
      %164 = arith.addf %156, %163 : vector<126x128xf32>
      %c2_i32_140 = arith.constant 2 : i32
      %165 = arith.addi %107, %c2_i32_140 : i32
      %c0_141 = arith.constant 0 : index
      %166 = arith.index_cast %165 : i32 to index
      %c1_142 = arith.constant 1 : index
      %c0_143 = arith.constant 0 : index
      %167 = vector.load %arg1[%c0_141, %166, %c1_142, %c0_143] : memref<1x128x128x3xbf16, #tpu.memory_space<vmem>>, vector<1x1x126x3xbf16>
      %168 = vector.shape_cast %167 : vector<1x1x126x3xbf16> to vector<126x3xbf16>
      %c7_144 = arith.constant 7 : index
      %c0_145 = arith.constant 0 : index
      %c0_146 = arith.constant 0 : index
      %169 = vector.load %arg2[%c7_144, %c0_145, %c0_146] : memref<9x3x128xbf16, #tpu.memory_space<vmem>>, vector<1x3x128xbf16>
      %170 = vector.shape_cast %169 : vector<1x3x128xbf16> to vector<3x128xbf16>
      %cst_147 = arith.constant dense<0.000000e+00> : vector<126x128xf32>
      %171 = tpu.matmul %168, %170, %cst_147 {dimension_numbers = #tpu.dot_dimension_numbers<[1], [0], [0], [1], [0, 0, 1, 1], [], []>} : vector<126x3xbf16>, vector<3x128xbf16>, vector<126x128xf32> -> vector<126x128xf32>
      %172 = arith.addf %164, %171 : vector<126x128xf32>
      %c2_i32_148 = arith.constant 2 : i32
      %173 = arith.addi %107, %c2_i32_148 : i32
      %c0_149 = arith.constant 0 : index
      %174 = arith.index_cast %173 : i32 to index
      %c2_150 = arith.constant 2 : index
      %c0_151 = arith.constant 0 : index
      %175 = vector.load %arg1[%c0_149, %174, %c2_150, %c0_151] : memref<1x128x128x3xbf16, #tpu.memory_space<vmem>>, vector<1x1x126x3xbf16>
      %176 = vector.shape_cast %175 : vector<1x1x126x3xbf16> to vector<126x3xbf16>
      %c8_152 = arith.constant 8 : index
      %c0_153 = arith.constant 0 : index
      %c0_154 = arith.constant 0 : index
      %177 = vector.load %arg2[%c8_152, %c0_153, %c0_154] : memref<9x3x128xbf16, #tpu.memory_space<vmem>>, vector<1x3x128xbf16>
      %178 = vector.shape_cast %177 : vector<1x3x128xbf16> to vector<3x128xbf16>
      %cst_155 = arith.constant dense<0.000000e+00> : vector<126x128xf32>
      %179 = tpu.matmul %176, %178, %cst_155 {dimension_numbers = #tpu.dot_dimension_numbers<[1], [0], [0], [1], [0, 0, 1, 1], [], []>} : vector<126x3xbf16>, vector<3x128xbf16>, vector<126x128xf32> -> vector<126x128xf32>
      %180 = arith.addf %172, %179 : vector<126x128xf32>
      %181 = vector.broadcast %0 : vector<1x128xf32> to vector<126x128xf32>
      %182 = arith.addf %180, %181 : vector<126x128xf32>
      %cst_156 = arith.constant 0.000000e+00 : f32
      %183 = vector.broadcast %cst_156 : f32 to vector<126x128xf32>
      %184 = arith.maximumf %182, %183 : vector<126x128xf32>
      %185 = arith.maximumf %105, %184 : vector<126x128xf32>
      %186 = arith.truncf %185 : vector<126x128xf32> to vector<126x128xbf16>
      %cst_157 = arith.constant dense<0.000000e+00> : vector<63x128xf32>
      %187 = tpu.matmul %9, %186, %cst_157 {dimension_numbers = #tpu.dot_dimension_numbers<[1], [0], [0], [1], [0, 0, 1, 1], [], []>} : vector<63x126xbf16>, vector<126x128xbf16>, vector<63x128xf32> -> vector<63x128xf32>
      %cst_158 = arith.constant dense<0.000000e+00> : vector<63x128xf32>
      %188 = tpu.matmul %18, %186, %cst_158 {dimension_numbers = #tpu.dot_dimension_numbers<[1], [0], [0], [1], [0, 0, 1, 1], [], []>} : vector<63x126xbf16>, vector<126x128xbf16>, vector<63x128xf32> -> vector<63x128xf32>
      %189 = arith.maximumf %187, %188 : vector<63x128xf32>
      %190 = arith.truncf %189 : vector<63x128xf32> to vector<63x128xbf16>
      %c0_159 = arith.constant 0 : index
      %191 = arith.index_cast %arg6 : i32 to index
      %c0_160 = arith.constant 0 : index
      %c0_161 = arith.constant 0 : index
      %192 = vector.load %arg4[%c0_159, %191, %c0_160, %c0_161] : memref<1x63x63x128xbf16, #tpu.memory_space<vmem>>, vector<1x1x63x128xbf16>
      %193 = vector.shape_cast %192 : vector<1x1x63x128xbf16> to vector<63x128xbf16>
      %194 = vector.shape_cast %190 : vector<63x128xbf16> to vector<1x1x63x128xbf16>
      tpu.vector_store %arg4[%c0_159, %191, %c0_160, %c0_161], %194 {strides = array<i32>} : memref<1x63x63x128xbf16, #tpu.memory_space<vmem>>, vector<1x1x63x128xbf16>,
      %cst_162 = arith.constant dense<0.000000e+00> : vector<128xf32>
      %195 = vector.multi_reduction <add>, %189, %cst_162 [0] : vector<63x128xf32> to vector<128xf32>
      %196 = vector.shape_cast %195 : vector<128xf32> to vector<1x128xf32>
      %197 = arith.addf %arg7, %196 : vector<1x128xf32>
      %198 = arith.mulf %189, %189 : vector<63x128xf32>
      %cst_163 = arith.constant dense<0.000000e+00> : vector<128xf32>
      %199 = vector.multi_reduction <add>, %198, %cst_163 [0] : vector<63x128xf32> to vector<128xf32>
      %200 = vector.shape_cast %199 : vector<128xf32> to vector<1x128xf32>
      %201 = arith.addf %arg8, %200 : vector<1x128xf32>
      scf.yield %197, %201 : vector<1x128xf32>, vector<1x128xf32>
    }
    %c63_i32_7 = arith.constant 63 : i32
    %c0_8 = arith.constant 0 : index
    %c0_9 = arith.constant 0 : index
    %c0_10 = arith.constant 0 : index
    %22 = vector.load %arg5[%c0_8, %c0_9, %c0_10] : memref<1x2x128xf32, #tpu.memory_space<vmem>>, vector<1x1x128xf32>
    %23 = vector.shape_cast %22 : vector<1x1x128xf32> to vector<1x128xf32>
    %24 = vector.shape_cast %21#0 : vector<1x128xf32> to vector<1x1x128xf32>
    tpu.vector_store %arg5[%c0_8, %c0_9, %c0_10], %24 {strides = array<i32>} : memref<1x2x128xf32, #tpu.memory_space<vmem>>, vector<1x1x128xf32>,
    %c0_11 = arith.constant 0 : index
    %c1 = arith.constant 1 : index
    %c0_12 = arith.constant 0 : index
    %25 = vector.load %arg5[%c0_11, %c1, %c0_12] : memref<1x2x128xf32, #tpu.memory_space<vmem>>, vector<1x1x128xf32>
    %26 = vector.shape_cast %25 : vector<1x1x128xf32> to vector<1x128xf32>
    %27 = vector.shape_cast %21#1 : vector<1x128xf32> to vector<1x1x128xf32>
    tpu.vector_store %arg5[%c0_11, %c1, %c0_12], %27 {strides = array<i32>} : memref<1x2x128xf32, #tpu.memory_space<vmem>>, vector<1x1x128xf32>,
    return
  }
  func.func @transform_0(%arg0: i32) -> (i32, i32, i32, i32) {
    %c0_i32 = arith.constant 0 : i32
    %c0_i32_0 = arith.constant 0 : i32
    %c0_i32_1 = arith.constant 0 : i32
    %c0_i32_2 = arith.constant 0 : i32
    return %arg0, %c0_i32, %c0_i32_0, %c0_i32_1 : i32, i32, i32, i32
  }
  func.func @transform_1(%arg0: i32) -> (i32, i32, i32) {
    %c0_i32 = arith.constant 0 : i32
    %c0_i32_0 = arith.constant 0 : i32
    %c0_i32_1 = arith.constant 0 : i32
    %c0_i32_2 = arith.constant 0 : i32
    return %c0_i32, %c0_i32_0, %c0_i32_1 : i32, i32, i32
  }
  func.func @transform_2(%arg0: i32) -> (i32, i32) {
    %c0_i32 = arith.constant 0 : i32
    %c0_i32_0 = arith.constant 0 : i32
    %c0_i32_1 = arith.constant 0 : i32
    return %c0_i32, %c0_i32_0 : i32, i32
  }
  func.func @transform_3(%arg0: i32) -> (i32, i32, i32, i32) {
    %c0_i32 = arith.constant 0 : i32
    %c0_i32_0 = arith.constant 0 : i32
    %c0_i32_1 = arith.constant 0 : i32
    %c0_i32_2 = arith.constant 0 : i32
    return %arg0, %c0_i32, %c0_i32_0, %c0_i32_1 : i32, i32, i32, i32
  }
  func.func @transform_4(%arg0: i32) -> (i32, i32, i32) {
    %c0_i32 = arith.constant 0 : i32
    %c0_i32_0 = arith.constant 0 : i32
    %c0_i32_1 = arith.constant 0 : i32
    return %arg0, %c0_i32, %c0_i32_0 : i32, i32, i32
  }
}

</mosaic_0001>

<bundles_post_ra>
// kernel: tpu_custom_call.1
= control target key start
LH: loop header
LB: loop body
LE: loop exit
PB: predicated region body
PF: predicated region fallthrough
CT: control target
= control target key end

     0   :  { %10 = vsyncpa [#allocation3], 0  ;;  %s4659_s0 = inlined_call_operand.vmem [shape: bf16[2,128,128,3], index: 0, kind: input, shape index: {}]   ;;  %s4660_s1 = inlined_call_operand.vmem [shape: bf16[9,3,128], index: 1, kind: input, shape index: {}]   ;;  %s4661_s2 = inlined_call_operand.vmem [shape: f32[1,128], index: 2, kind: input, shape index: {}]   ;;  %s4662_s3 = inlined_call_operand.vmem [shape: bf16[2,63,63,128], index: 3, kind: output, shape index: {0}]   ;;  %s4663_s4 = inlined_call_operand.hbm [shape: f32[2,2,128], index: 4, kind: output, shape index: {1}]  }
   0x1   :  { %12 = vsyncpa [#allocation3 + $0x1], 0  ;;  %s3292_s15 = smov 0   ;;  %s3294_s16 = smov 0  }
   0x2   :  { %s3296_s17 = smov 0   ;;  %s3298_s18 = smov 0  }
   0x3 LB: > { %s3313_s19 = sadd.s32 4294967295, %s3251_s18   ;;  %s2672_s20 = sadd.s32 4294967294, %s3251_s18   ;;  %s3251_s18 = sphi %s3298_s18, %s4760_s18   ;;  %s3247_s17 = sphi %s3296_s17, %s4759_s17   ;;  %s3243_s16 = sphi %s3294_s16, %s4758_s16   ;;  %s3239_s15 = sphi %s3292_s15, %s4757_s15  }
   0x4   : > { %s3317_s21 = sadd.s32 1, %s3251_s18   ;;  %s119_s22 = sadd.s32 1, %s3247_s17 }
   0x5   : > { %s116_s23 = ssub.s32 %s3251_s18, %s3317_s21  ;;  %p129_p0 = scmp.ne.s32.totalorder %s3247_s17, %s3243_s16 }
   0x6   : > { %p117_p1 = scmp.eq.s32.totalorder %s116_s23, 0  ;;  %p130_p2 = scmp.eq.s32.totalorder %s3313_s19, 1 }
   0x7   : > { %p135_p3 = scmp.ne.s32.totalorder %s3243_s16, %s3239_s15  ;;  %p136_p4 = scmp.eq.s32.totalorder %s2672_s20, 1 }
   0x8   : > { %s3328_s24 = scalar_select %p117_p1, %s3247_s17, %s119_s22  }
   0x9   : > { %p3330_p5 = por %p130_p2, %p129_p0  ;;  %p3334_p6 = por %p136_p4, %p135_p3 }
   0xa   : > { %p2675_p7 = scmp.ge.s32.totalorder %s3251_s18, 1  ;;  %p168_p8 = scmp.lt.s32.totalorder %s3251_s18, 3 }
   0xc   : > { %p169_p9 = pnand %p2675_p7, %p168_p8 }
   0xe   : > { %172 = sbr.rel (%p169_p9) target bundleno = 1038 (0x40e), region = 32 }
  0x13   : > { %s196_s27 = sand.u32 1, %s3243_s16   ;;  %p199_p10 = scmp.lt.s32.totalorder %s3313_s19, 1  ;;  %v3345_v0 = vld [vmem:[%s4661_s2] sm:$0x1]  ;;  %v211_v1 = vlaneseq  ;;  %v3265_v19 = vmov 0.0   ;;  %v3431_v52 = vmov 0.0  }
  0x14   : > { %4691 = vst [vmem:[#allocation5_spill] sm:$0xff] %v3345_v0  ;;  %s3349_s30 = sshll.u32 %s196_s27, 1  ;;  %v3433_v53 = vmov 0.0   ;;  %s3435_s20 = smov 0  }
  0x15   : > { %v212_v2 = vshrl.u32 %v211_v1, 7  ;;  %s200_s5 = scalar_select %p199_p10, %s3313_s19, 1  ;;  %v3352_v3 = vand.u32 127, %v211_v1 }
  0x16   : > { %s3429_s14 = scalar_lea.vmem [#allocation2], %s3349_s30 }
  0x17   : > { %v213_v4 = vadd.s32 8, %v212_v2  ;;  %v214_v5 = vadd.s32 16, %v212_v2  ;;  %v215_v6 = vadd.s32 24, %v212_v2  ;;  %v216_v7 = vadd.s32 32, %v212_v2  ;;  %s3005_s6 = sshll.u32 %s200_s5, 13  ;;  %s3096_s7 = smul.u32 2016, %s200_s5 }
  0x18   : > { %v217_v8 = vadd.s32 40, %v212_v2  ;;  %v218_v9 = vadd.s32 48, %v212_v2  ;;  %v219_v10 = vadd.s32 56, %v212_v2  ;;  %v222_v11 = vmul.u32 2, %v212_v2  ;;  %s3357_s10 = scalar_lea.vmem %s4659_s0, %s3005_s6 }
  0x19   : > { %v223_v12 = vmul.u32 2, %v213_v4  ;;  %v224_v13 = vmul.u32 2, %v214_v5  ;;  %v225_v14 = vmul.u32 2, %v215_v6  ;;  %v226_v15 = vmul.u32 2, %v216_v7  ;;  %s3362_s13 = scalar_lea.vmem %s4662_s3, %s3096_s7 }
  0x1a   : > { %v227_v16 = vmul.u32 2, %v217_v8  ;;  %v228_v17 = vmul.u32 2, %v218_v9  ;;  %v229_v18 = vmul.u32 2, %v219_v10  ;;  %vm230_vm0 = vcmp.eq.s32.totalorder %v3352_v3, %v222_v11 }
  0x1b   : > { %vm231_vm1 = vcmp.eq.s32.totalorder %v3352_v3, %v223_v12  ;;  %vm232_vm2 = vcmp.eq.s32.totalorder %v3352_v3, %v224_v13  ;;  %vm233_vm3 = vcmp.eq.s32.totalorder %v3352_v3, %v225_v14  ;;  %vm234_vm4 = vcmp.eq.s32.totalorder %v3352_v3, %v226_v15 }
  0x1c   : > { %vm235_vm5 = vcmp.eq.s32.totalorder %v3352_v3, %v227_v16  ;;  %vm236_vm6 = vcmp.eq.s32.totalorder %v3352_v3, %v228_v17  ;;  %vm237_vm7 = vcmp.eq.s32.totalorder %v3352_v3, %v229_v18  ;;  %v3372_v20 = vsel %vm230_vm0, 1.0, %v3265_v19 }
  0x1d   : > { %4692 = vst [vmem:[#allocation6_spill] sm:$0xff] %v3372_v20  ;;  %v3374_v21 = vsel %vm231_vm1, 1.0, %v3265_v19  ;;  %v3376_v22 = vsel %vm232_vm2, 1.0, %v3265_v19  ;;  %v3378_v23 = vsel %vm233_vm3, 1.0, %v3265_v19  ;;  %v3380_v24 = vsel %vm234_vm4, 1.0, %v3265_v19 }
  0x1e   : > { %4693 = vst [vmem:[#allocation7_spill] sm:$0xff] %v3374_v21  ;;  %v3382_v25 = vsel %vm235_vm5, 1.0, %v3265_v19  ;;  %v3384_v26 = vsel %vm236_vm6, 1.0, %v3265_v19  ;;  %v3386_v27 = vsel %vm237_vm7, 1.0, %v3265_v19  ;;  %v250_v32 = vadd.s32 1, %v222_v11 }
  0x1f   : > { %4694 = vst [vmem:[#allocation8_spill] sm:$0xff] %v3376_v22  ;;  %v251_v33 = vadd.s32 1, %v223_v12  ;;  %v252_v34 = vadd.s32 1, %v224_v13  ;;  %v253_v35 = vadd.s32 1, %v225_v14  ;;  %v254_v36 = vadd.s32 1, %v226_v15 }
  0x20   : > { %4695 = vst [vmem:[#allocation9_spill] sm:$0xff] %v3378_v23  ;;  %v255_v37 = vadd.s32 1, %v227_v16  ;;  %v256_v38 = vadd.s32 1, %v228_v17  ;;  %v257_v39 = vadd.s32 1, %v229_v18  ;;  %vm258_vm8 = vcmp.eq.s32.totalorder %v3352_v3, %v250_v32 }
  0x21   : > { %4696 = vst [vmem:[#allocation10_spill] sm:$0xff] %v3380_v24  ;;  %vm259_vm9 = vcmp.eq.s32.totalorder %v3352_v3, %v251_v33  ;;  %vm260_vm10 = vcmp.eq.s32.totalorder %v3352_v3, %v252_v34  ;;  %vm261_vm11 = vcmp.eq.s32.totalorder %v3352_v3, %v253_v35  ;;  %vm262_vm12 = vcmp.eq.s32.totalorder %v3352_v3, %v254_v36 }
  0x22   : > { %4697 = vst [vmem:[#allocation11_spill] sm:$0xff] %v3382_v25  ;;  %vm263_vm13 = vcmp.eq.s32.totalorder %v3352_v3, %v255_v37  ;;  %vm264_vm14 = vcmp.eq.s32.totalorder %v3352_v3, %v256_v38  ;;  %vm265_vm15 = vcmp.eq.s32.totalorder %v3352_v3, %v257_v39  ;;  %v3404_v40 = vsel %vm258_vm8, 1.0, %v3265_v19 }
  0x23   : > { %4698 = vst [vmem:[#allocation12_spill] sm:$0xff] %v3384_v26  ;;  %v3406_v41 = vsel %vm259_vm9, 1.0, %v3265_v19  ;;  %v3408_v42 = vsel %vm260_vm10, 1.0, %v3265_v19  ;;  %v3410_v43 = vsel %vm261_vm11, 1.0, %v3265_v19  ;;  %v3412_v44 = vsel %vm262_vm12, 1.0, %v3265_v19 }
  0x24   : > { %4699 = vst [vmem:[#allocation13_spill] sm:$0xff] %v3386_v27  ;;  %v3414_v45 = vsel %vm263_vm13, 1.0, %v3265_v19  ;;  %v3416_v46 = vsel %vm264_vm14, 1.0, %v3265_v19  ;;  %v3418_v47 = vsel %vm265_vm15, 1.0, %v3265_v19 }
  0x25   : > { %4700 = vst [vmem:[#allocation14_spill] sm:$0xff] %v3404_v40 }
  0x26   : > { %4701 = vst [vmem:[#allocation15_spill] sm:$0xff] %v3406_v41 }
  0x27   : > { %4702 = vst [vmem:[#allocation16_spill] sm:$0xff] %v3408_v42 }
  0x28   : > { %4703 = vst [vmem:[#allocation17_spill] sm:$0xff] %v3410_v43 }
  0x29   : > { %4704 = vst [vmem:[#allocation18_spill] sm:$0xff] %v3412_v44 }
  0x2a   : > { %4705 = vst [vmem:[#allocation19_spill] sm:$0xff] %v3414_v45 }
  0x2b   : > { %4706 = vst [vmem:[#allocation20_spill] sm:$0xff] %v3416_v46 }
  0x2c   : > { %4707 = vst [vmem:[#allocation21_spill] sm:$0xff] %v3418_v47 }
  0x2d LB: >> { %4708 = vst [vmem:[#allocation22_spill] sm:$0xff] %v3255_v52  ;;  %v306_v54 = vld [vmem:[%s4660_s1] sm:$0x3]  ;;  %vm439_vm0 = vcmask 1040384   ;;  %vm440_vm1 = vcmask 1041408   ;;  %v3266_v55 = vmov 65535   ;;  %s3263_s20 = sphi %s3435_s20, %s283_s20   ;;  %v3259_v53 = vphi %v3433_v53, %v4756_v53   ;;  %v3255_v52 = vphi %v3431_v52, %v4755_v52  }
  0x2e   : >> { %4709 = vst [vmem:[#allocation23_spill] sm:$0xff] %v3259_v53  ;;  %v441_v56 = vsel %vm439_vm0, 4294967295, %v3266_v55  ;;  %v2683_v57 = vld [vmem:[%s4660_s1 + $0x2] sm:$0x3]  ;;  %s3007_s30 = sshll.u32 %s3263_s20, 7  ;;  %vm414_vm2 = vcmask 23552  }
  0x2f   : >> { %v3452_v58 = vsel %vm440_vm1, %v441_v56, 0  ;;  %s3459_s5 = scalar_lea.vmem %s3357_s10, %s3007_s30  ;;  %v2724_v9 = vld [vmem:[%s4660_s1 + $0x4] sm:$0x3]  ;;  %vm350_vm3 = vsmask.f32 7424  ;;  %vm573_vm4 = vcmask 1046528  }
  0x30   : >> { %v3456_v59 = vand.u32 %v3452_v58, %v306_v54  ;;  %v3462_v60 = vand.u32 %v2683_v57, %v3452_v58  ;;  %v3037_v61 = vld [vmem:[%s3459_s5] sm:$0xff]   ;;  %v3466_v62 = vld [vmem:[%s3459_s5 + $0x8] sm:$0xff]  ;;  %v3469_v63 = vld [vmem:[%s3459_s5 + $0x30] sm:$0xff]  ;;  %v3491_v14 = vand.u32 %v2724_v9, %v3452_v58  ;;  %vm2378_vm5 = vcmask 1031168  }
  0x31   : >> { %v352_v1 = vshrl.u32 %v3037_v61, 16  ;;  %v354_v2 = vshll.u32 %v3037_v61, 16  ;;  %v3474_v3 = vld [vmem:[%s3459_s5 + $0x38] sm:$0xff]   ;;  %v359_v4 = vshll.u32 %v3466_v62, 16  ;;  %v399_v5 = vshll.u32 %v3469_v63, 16  ;;  %v3506_v32 = vld [vmem:[%s3459_s5 + $0x10] sm:$0xff] }
  0x32   : >> { %525 = vmatpush.bf16.msra.mxu1 %v3456_v59  ;;  %453 = vmatpush.bf16.msra.mxu0 %v3462_v60  ;;  %v403_v6 = vshrl.u32 %v3469_v63, 16  ;;  %v407_v7 = vshll.u32 %v3474_v3, 16  ;;  %v2751_v15 = vld [vmem:[%s4660_s1 + $0x6] sm:$0x3]  ;;  %v363_v33 = vshrl.u32 %v3466_v62, 16  ;;  %v367_v34 = vshll.u32 %v3506_v32, 16 }
  0x33   : >> { %3094 = vmatpush.bf16.msra.mxu2 %v3462_v60  ;;  %3095 = vmatpush.bf16.msra.mxu3 %v3456_v59  ;;  %v356_v8 = vrot.slane %v354_v2, 1  ;;  %v361_v10 = vrot.slane %v359_v4, 1  ;;  %v3486_v11 = vrot.slane %v399_v5, 1  ;;  %v3500_v18 = vand.u32 %v2751_v15, %v3452_v58  ;;  %v3074_v35 = vld [vmem:[%s3459_s5 + $0x38] sm:$0xf]   ;;  %v3537_v15 = vld [vmem:[%s3459_s5 + $0x20] sm:$0xff] }
  0x34   : >> { %v409_v12 = vrot.slane %v407_v7, 1  ;;  %v3093_v36 = vld [vmem:[%s3459_s5 + $0x38] sm:$0x70]  ;;  %v369_v38 = vrot.slane %v367_v34, 1  ;;  %v411_v39 = vshrl.u32 %v3474_v3, 16  ;;  %v371_v2 = vshrl.u32 %v3506_v32, 16 }
  0x35   : >> { %2716 = vmatmul.msk.bf16.vlgmr.msra.gmra.mxu1 %vm414_vm2, %v3037_v61  ;;  %v357_v13 = vor.u32 %v356_v8, %v352_v1  ;;  %v405_v16 = vor.u32 %v403_v6, %v3486_v11  ;;  %v365_v37 = vor.u32 %v363_v33, %v361_v10  ;;  %v3075_v54 = vor.u32 %v3093_v36, %v3074_v35  ;;  %v3010_v57 = vld [vmem:[%s3459_s5 + $0x18] sm:$0xff]  ;;  %v3076_v61 = vld [vmem:[%s3459_s5] sm:$0xf0]  ;;  %v3077_v1 = vld [vmem:[%s3459_s5] sm:$0xe] }
  0x36   : >> { %2722 = vmatmul.msk.bf16.vlgmr.msra.gmra.mxu3 %vm414_vm2, %v3469_v63  ;;  %v413_v56 = vor.u32 %v411_v39, %v409_v12  ;;  %v375_v4 = vshll.u32 %v3010_v57, 16  ;;  %v3078_v5 = vor.u32 %v3077_v1, %v3076_v61  ;;  %v373_v6 = vor.u32 %v371_v2, %v369_v38  ;;  %v3541_v33 = vld [vmem:[%s3459_s5 + $0x48] sm:$0xff]  ;;  %v3565_v61 = vld [vmem:[%s3459_s5 + $0x50] sm:$0xff]  ;;  %v3695_v30 = vld [vmem:[%s3459_s5 + $0x80] sm:$0xff]  }
  0x37   : >> { %v362_v17 = vsel %vm350_vm3, %v357_v13, %v361_v10  ;;  %623 = vmatpush.bf16.msrb.mxu2 %v3491_v14  ;;  %v410_v19 = vsel %vm350_vm3, %v405_v16, %v409_v12  ;;  %777 = vmatpush.bf16.msrb.mxu3 %v3500_v18  ;;  %v370_v55 = vsel %vm350_vm3, %v365_v37, %v369_v38  ;;  %v575_v9 = vrot.slane %v3466_v62, 1  ;;  %v3526_v10 = vld [vmem:[%s3459_s5 + $0x40] sm:$0xff]   ;;  %v3552_v37 = vld [vmem:[%s3459_s5 + $0x28] sm:$0xff] }
  0x38   : >> { %2708 = vmatmul.msk.bf16.vlgmr.msra.gmra.mxu0 %vm414_vm2, %v362_v17  ;;  %2714 = vmatmul.msk.bf16.vlgmr.msra.gmra.mxu2 %vm414_vm2, %v410_v19  ;;  %v377_v7 = vrot.slane %v375_v4, 1  ;;  %v574_v8 = vrot.slane %v3078_v5, 1  ;;  %v383_v16 = vshll.u32 %v3537_v15, 16  ;;  %v577_v34 = vrot.slane %v3506_v32, 1  ;;  %v2785_v2 = vld [vmem:[%s4660_s1 + $0x8] sm:$0x3] }
  0x39   : >> { %v387_v39 = vshrl.u32 %v3537_v15, 16  ;;  %v579_v1 = vrot.slane %v3010_v57, 1  ;;  %v922_v4 = vand.u32 %v2785_v2, %v3452_v58  ;;  %v998_v2 = vrot.slane %v3565_v61, 1 }
  0x3a   : >> { %v378_v12 = vsel %vm350_vm3, %v373_v6, %v377_v7  ;;  %v576_v13 = vsel %vm573_vm4, %v574_v8, %v575_v9  ;;  %v385_v19 = vrot.slane %v383_v16, 1  ;;  %v578_v36 = vsel %vm573_vm4, %v575_v9, %v577_v34 }
  0x3b   : >> { %931 = vmatpush.bf16.msrb.mxu0 %v922_v4  ;;  %v581_v8 = vrot.slane %v3537_v15, 1  ;;  %v843_v16 = vshll.u32 %v3526_v10, 16  ;;  %vm2491_vm6 = vcmask 1043456   ;;  %vm2492_vm7 = vsmask.f32 3328 }
  0x3c   : >> { %vm2493_vm8 = vmand %vm2491_vm6, %vm2492_vm7 }
  0x45   : >> { %2717 = vmatmul.msk.bf16.gmra.mxu1 %vm414_vm2, %v3466_v62  ;;  %v379_v62 = vshrl.u32 %v3010_v57, 16 }
  0x46   : >> { %2723 = vmatmul.msk.bf16.gmra.mxu3 %vm414_vm2, %v3075_v54  ;;  %v391_v54 = vshll.u32 %v3552_v37, 16 }
  0x47   : >> { %v381_v17 = vor.u32 %v379_v62, %v377_v7  ;;  %v3581_v7 = vld [vmem:[%s3459_s5 + $0x58] sm:$0xff]  ;;  %v3081_v62 = vld [vmem:[%s3459_s5 + $0x40] sm:$0xe] }
  0x48   : >> { %2709 = vmatmul.msk.bf16.gmra.mxu0 %vm414_vm2, %v370_v55  ;;  %2715 = vmatmul.msk.bf16.gmra.mxu2 %vm414_vm2, %v413_v56  ;;  %v389_v55 = vor.u32 %v387_v39, %v385_v19  ;;  %v393_v56 = vrot.slane %v391_v54, 1  ;;  %v3603_v54 = vld [vmem:[%s3459_s5 + $0x60] sm:$0xff] }
  0x49   : >> { %v386_v35 = vsel %vm350_vm3, %v381_v17, %v385_v19  ;;  %v841_v17 = vshrl.u32 %v3526_v10, 16  ;;  %v845_v19 = vrot.slane %v843_v16, 1  ;;  %v872_v29 = vshrl.u32 %v3603_v54, 16 }
  0x4a   : >> { %v394_v5 = vsel %vm350_vm3, %v389_v55, %v393_v56  ;;  %v583_v55 = vrot.slane %v3552_v37, 1 }
  0x55   : >> { %2718 = vmatmul.msk.bf16.gmra.mxu1 %vm414_vm2, %v3506_v32  ;;  %v2795_v32 = vld [vmem:[%s4660_s1 + $0xa] sm:$0x3] }
  0x56   : >> { %2776 = vmatmul.msk.bf16.vlgmr.msrb.gmra.mxu3 %vm414_vm2, %v3526_v10  ;;  %v3558_v38 = vand.u32 %v2795_v32, %v3452_v58  ;;  %v846_v32 = vor.u32 %v845_v19, %v841_v17 }
  0x58   : >> { %2710 = vmatmul.msk.bf16.gmra.mxu0 %vm414_vm2, %v378_v12  ;;  %2725 = vmatmul.msk.bf16.vlgmr.msrb.gmra.mxu2 %vm414_vm2, %v576_v13  ;;  %v582_v12 = vsel %vm573_vm4, %v579_v1, %v581_v8  ;;  %v3080_v13 = vld [vmem:[%s3459_s5 + $0x40] sm:$0xf0] }
  0x59   : >> { %1044 = vmatpush.bf16.msrb.mxu1 %v3558_v38 }
  0x5d   : >> { %1565 = vmatpush.bf16.msra.mxu1 %v3462_v60  ;;  %v580_v60 = vsel %vm573_vm4, %v577_v34, %v579_v1  ;;  %v584_v1 = vsel %vm573_vm4, %v581_v8, %v583_v55  ;;  %v585_v8 = vrot.slane %v3469_v63, 1  ;;  %v858_v63 = vshrl.u32 %v3565_v61, 16 }
  0x65   : >> { %2719 = vmatmul.msk.bf16.gmra.mxu1 %vm414_vm2, %v3010_v57  ;;  %v395_v57 = vshrl.u32 %v3552_v37, 16 }
  0x66   : >> { %2777 = vmatmul.msk.bf16.gmra.mxu3 %vm414_vm2, %v3541_v33 }
  0x67   : >> { %v397_v6 = vor.u32 %v395_v57, %v393_v56 }
  0x68   : >> { %2711 = vmatmul.msk.bf16.gmra.mxu0 %vm414_vm2, %v386_v35  ;;  %2726 = vmatmul.msk.bf16.gmra.mxu2 %vm414_vm2, %v578_v36  ;;  %v847_v35 = vshll.u32 %v3541_v33, 16 }
  0x69   : >> { %v402_v9 = vsel %vm350_vm3, %v397_v6, %v3486_v11  ;;  %v996_v11 = vrot.slane %v3541_v33, 1 }
  0x6a   : >> { %v849_v39 = vrot.slane %v847_v35, 1  ;;  %v2822_v35 = vld [vmem:[%s4660_s1 + $0xc] sm:$0x3] }
  0x6c   : >> { %v3609_v56 = vsel %vm350_vm3, %v846_v32, %v849_v39  ;;  %v3654_v32 = vand.u32 %v2822_v35, %v3452_v58  ;;  %v868_v35 = vshll.u32 %v3603_v54, 16 }
  0x6e   : >> { %1198 = vmatpush.bf16.msra.mxu2 %v3654_v32  ;;  %v870_v31 = vrot.slane %v868_v35, 1 }
  0x70   : >> { %v874_v47 = vor.u32 %v872_v29, %v870_v31  ;;  %v3742_v29 = vld [vmem:[%s3459_s5 + $0x90] sm:$0xff] }
  0x72   : >> { %1614 = vmatpush.bf16.msrb.mxu2 %v3456_v59  ;;  %v865_v59 = vshrl.u32 %v3581_v7, 16 }
  0x75   : >> { %2720 = vmatmul.msk.bf16.gmra.mxu1 %vm414_vm2, %v3537_v15  ;;  %v3082_v15 = vor.u32 %v3081_v62, %v3080_v13  ;;  %v1000_v13 = vrot.slane %v3581_v7, 1  ;;  %v861_v62 = vshll.u32 %v3581_v7, 16 }
  0x76   : >> { %2778 = vmatmul.msk.bf16.gmra.mxu3 %vm414_vm2, %v3565_v61 }
  0x77   : >> { %v995_v34 = vrot.slane %v3082_v15, 1  ;;  %v3642_v15 = vsel %vm573_vm4, %v998_v2, %v1000_v13  ;;  %v863_v19 = vrot.slane %v861_v62, 1  ;;  %v1002_v62 = vrot.slane %v3603_v54, 1 }
  0x78   : >> { %2712 = vmatmul.msk.bf16.gmra.mxu0 %vm414_vm2, %v394_v5  ;;  %2727 = vmatmul.msk.bf16.gmra.mxu2 %vm414_vm2, %v580_v60  ;;  %v854_v5 = vshll.u32 %v3565_v61, 16  ;;  %v3621_v60 = vsel %vm573_vm4, %v996_v11, %v998_v2 }
  0x79   : >> { %v3600_v36 = vsel %vm573_vm4, %v995_v34, %v996_v11  ;;  %v3645_v34 = vld [vmem:[%s3459_s5 + $0x70] sm:$0xff]  ;;  %v587_v11 = vrot.slane %v3474_v3, 1  ;;  %v2856_v3 = vld [vmem:[%s4660_s1 + $0xe] sm:$0x3]  ;;  %v867_v51 = vor.u32 %v865_v59, %v863_v19 }
  0x7a   : >> { %v856_v6 = vrot.slane %v854_v5, 1  ;;  %4711 = vst [vmem:[#allocation25_spill] sm:$0xff] %v3645_v34 }
  0x7b   : >> { %v588_v2 = vsel %vm573_vm4, %v585_v8, %v587_v11 }
  0x7c   : >> { %v860_v17 = vor.u32 %v858_v63, %v856_v6 }
  0x85   : >> { %2721 = vmatmul.msk.bf16.gmra.mxu1 %vm414_vm2, %v3552_v37  ;;  %v851_v37 = vshrl.u32 %v3541_v33, 16 }
  0x86   : >> { %2779 = vmatmul.msk.bf16.gmra.mxu3 %vm414_vm2, %v3581_v7 }
  0x87   : >> { %v853_v57 = vor.u32 %v851_v37, %v849_v39  ;;  %v3669_v37 = vand.u32 %v2856_v3, %v3452_v58 }
  0x88   : >> { %2713 = vmatmul.msk.bf16.gmra.mxu0 %vm414_vm2, %v402_v9  ;;  %2728 = vmatmul.msk.bf16.gmra.mxu2 %vm414_vm2, %v582_v12  ;;  %v586_v12 = vsel %vm573_vm4, %v583_v55, %v585_v8  ;;  %v3657_v55 = vsel %vm350_vm3, %v860_v17, %v863_v19  ;;  %v3228_v8 = vld [vmem:[%s3459_s5 + $0x78] sm:$0xf]   ;;  %v1264_v19 = vshll.u32 %v3695_v30, 16 }
  0x89   : >> { %v3630_v9 = vsel %vm350_vm3, %v853_v57, %v856_v6  ;;  %1352 = vmatpush.bf16.msra.mxu3 %v3669_v37  ;;  %v3678_v6 = vld [vmem:[%s3459_s5 + $0x78] sm:$0xff]  }
  0x8a   : >> { %v894_v20 = vshrl.u32 %v3678_v6, 16 }
  0x8d   : >> { %1663 = vmatpush.bf16.msrb.mxu3 %v3491_v14 }
  0x95   : >> { %2796 = vmatmul.msk.bf16.vlgmr.msrb.gmra.mxu1 %vm414_vm2, %v3600_v36 }
  0x96   : >> { %2780 = vmatmul.msk.bf16.gmra.mxu3 %vm414_vm2, %v3603_v54  ;;  %1793 = vmatpush.bf16.msrb.mxu1 %v922_v4  ;;  %v3624_v4 = vld [vmem:[%s3459_s5 + $0x68] sm:$0xff] }
  0x97   : >> { %4710 = vst [vmem:[#allocation24_spill] sm:$0xff] %v3624_v4  ;;  %v875_v48 = vshll.u32 %v3624_v4, 16 }
  0x98   : >> { %2786 = vmatmul.msk.bf16.vlgmr.msrb.gmra.mxu0 %vm414_vm2, %v3609_v56  ;;  %2729 = vmatmul.msk.bf16.gmra.mxu2 %vm414_vm2, %v584_v1 }
  0x99   : >> { %v877_v26 = vrot.slane %v875_v48, 1 }
  0xa5   : >> { %2797 = vmatmul.msk.bf16.gmra.mxu1 %vm414_vm2, %v3621_v60 }
  0xa6   : >> { %2781 = vmatmul.msk.bf16.gmra.mxu3 %vm414_vm2, %v3624_v4 }
  0xa8   : >> { %2787 = vmatmul.msk.bf16.gmra.mxu0 %vm414_vm2, %v3630_v9  ;;  %2730 = vmatmul.msk.bf16.gmra.mxu2 %vm414_vm2, %v586_v12  ;;  %v3235_v12 = vld [vmem:[%s3459_s5 + $0x78] sm:$0x70] }
  0xa9   : >> { %v3692_v50 = vor.u32 %v3235_v12, %v3228_v8  ;;  %v3710_v8 = vld [vmem:[%s3459_s5 + $0x88] sm:$0xff] }
  0xaa   : >> { %v1268_v35 = vshll.u32 %v3710_v8, 16 }
  0xab   : >> { %4712 = vst [vmem:[#allocation26_spill] sm:$0xff] %v3692_v50 }
  0xb2   : >> { %v527_v16 = vpop.f32.mrf.mxu1 }
  0xb5   : >> { %2798 = vmatmul.msk.bf16.gmra.mxu1 %vm414_vm2, %v3642_v15  ;;  %v455_v39 = vpop.f32.mrf.mxu0 }
  0xb6   : >> { %2782 = vmatmul.msk.bf16.gmra.mxu3 %vm414_vm2, %v3645_v34  ;;  %v3664_v1 = vadd.f32 %v527_v16, %v455_v39 }
  0xb8   : >> { %2788 = vmatmul.msk.bf16.gmra.mxu0 %vm414_vm2, %v3657_v55  ;;  %2731 = vmatmul.msk.bf16.gmra.mxu2 %vm414_vm2, %v588_v2  ;;  %v3690_v2 = vsel %vm573_vm4, %v1000_v13, %v1002_v62 }
  0xb9   : >> { %v557_v5 = vpop.f32.mrf.mxu3 }
  0xba   : >> { %v529_v57 = vpop.f32.mrf.mxu1 }
  0xbb   : >> { %v485_v63 = vpop.f32.mrf.mxu2 }
  0xbc   : >> { %v3684_v17 = vadd.f32 %v557_v5, %v485_v63 }
  0xbd   : >> { %v457_v16 = vpop.f32.mrf.mxu0 }
  0xbe   : >> { %v3687_v39 = vadd.f32 %v529_v57, %v457_v16  ;;  %v3702_v57 = vsel %vm350_vm3, %v867_v51, %v870_v31  ;;  %v1262_v16 = vshrl.u32 %v3695_v30, 16  ;;  %v1266_v51 = vrot.slane %v1264_v19, 1 }
  0xc0   : >> { %v1267_v52 = vor.u32 %v1266_v51, %v1262_v16  ;;  %v3735_v16 = vsel %vm350_vm3, %v874_v47, %v877_v26  ;;  %v2866_v47 = vld [vmem:[%s4660_s1 + $0x10] sm:$0x3] }
  0xc1   : >> { %v559_v3 = vpop.f32.mrf.mxu3 }
  0xc2   : >> { %v532_v14 = vpop.f32.mrf.mxu1 }
  0xc3   : >> { %v487_v5 = vpop.f32.mrf.mxu2 }
  0xc4   : >> { %v3699_v49 = vadd.f32 %v559_v3, %v487_v5 }
  0xc5   : >> { %2799 = vmatmul.msk.bf16.gmra.mxu1 %vm414_vm2, %v3690_v2  ;;  %v460_v63 = vpop.f32.mrf.mxu0 }
  0xc6   : >> { %2783 = vmatmul.msk.bf16.gmra.mxu3 %vm414_vm2, %v3692_v50  ;;  %v3706_v13 = vadd.f32 %v532_v14, %v460_v63  ;;  %v1004_v63 = vrot.slane %v3624_v4, 1 }
  0xc8   : >> { %2789 = vmatmul.msk.bf16.gmra.mxu0 %vm414_vm2, %v3702_v57  ;;  %2732 = vmatmul.msk.bf16.gmra.mxu2 %vm414_vm2, %v587_v11  ;;  %v1270_v11 = vrot.slane %v1268_v35, 1  ;;  %v3725_v19 = vsel %vm573_vm4, %v1002_v62, %v1004_v63  ;;  %v1006_v35 = vrot.slane %v3645_v34, 1 }
  0xc9   : >> { %v562_v12 = vpop.f32.mrf.mxu3 }
  0xca   : >> { %v534_v59 = vpop.f32.mrf.mxu1  ;;  %v3769_v25 = vsel %vm573_vm4, %v1004_v63, %v1006_v35 }
  0xcb   : >> { %v490_v3 = vpop.f32.mrf.mxu2 }
  0xcc   : >> { %v3717_v14 = vadd.f32 %v562_v12, %v490_v3  ;;  %v3728_v12 = vsel %vm350_vm3, %v1267_v52, %v1270_v11  ;;  %v1272_v52 = vshrl.u32 %v3710_v8, 16 }
  0xcd   : >> { %v462_v5 = vpop.f32.mrf.mxu0 }
  0xce   : >> { %v3722_v28 = vadd.f32 %v534_v59, %v462_v5  ;;  %v879_v5 = vshrl.u32 %v3624_v4, 16 }
  0xd1   : >> { %v564_v53 = vpop.f32.mrf.mxu3 }
  0xd2   : >> { %v537_v46 = vpop.f32.mrf.mxu1 }
  0xd3   : >> { %v492_v3 = vpop.f32.mrf.mxu2 }
  0xd4   : >> { %v3732_v59 = vadd.f32 %v564_v53, %v492_v3  ;;  %v882_v3 = vshll.u32 %v3645_v34, 16 }
  0xd5   : >> { %2800 = vmatmul.msk.bf16.gmra.mxu1 %vm414_vm2, %v3725_v19  ;;  %v465_v27 = vpop.f32.mrf.mxu0 }
  0xd6   : >> { %2857 = vmatmul.msk.bf16.vlgmr.msra.gmra.mxu3 %vm414_vm2, %v3728_v12  ;;  %v3739_v62 = vadd.f32 %v537_v46, %v465_v27  ;;  %v1275_v27 = vshll.u32 %v3742_v29, 16  ;;  %v3755_v46 = vand.u32 %v2866_v47, %v3452_v58  ;;  %v1274_v58 = vor.u32 %v1272_v52, %v1270_v11 }
  0xd7   : >> { %2007 = vmatpush.bf16.msra.mxu3 %v3654_v32 }
  0xd8   : >> { %2790 = vmatmul.msk.bf16.gmra.mxu0 %vm414_vm2, %v3735_v16  ;;  %2847 = vmatmul.msk.bf16.vlgmr.msra.gmra.mxu2 %vm414_vm2, %v3695_v30  ;;  %v1277_v47 = vrot.slane %v1275_v27, 1 }
  0xd9   : >> { %v779_v31 = vpop.f32.mrf.mxu3  ;;  %1858 = vmatpush.bf16.msra.mxu2 %v3558_v38  ;;  %1465 = vmatpush.bf16.msra.mxu0 %v3755_v46 }
  0xda   : >> { %v539_v48 = vpop.f32.mrf.mxu1  ;;  %v3772_v42 = vsel %vm350_vm3, %v1274_v58, %v1277_v47  ;;  %v3797_v58 = vrot.slane %v3678_v6, 1 }
  0xdb   : >> { %v625_v53 = vpop.f32.mrf.mxu2 }
  0xdc   : >> { %v665_v51 = vadd.f32 %v625_v53, %v3664_v1  ;;  %v881_v1 = vor.u32 %v879_v5, %v877_v26  ;;  %v884_v53 = vrot.slane %v882_v3, 1  ;;  %v3785_v26 = vld [vmem:[%s3459_s5 + $0x98] sm:$0xff]  ;;  %4713 = vst [vmem:[#allocation27_spill] sm:$0xff] %v3797_v58  ;;  %v3807_v40 = vsel %vm573_vm4, %v1006_v35, %v3797_v58 }
  0xdd   : >> { %v467_v32 = vpop.f32.mrf.mxu0  ;;  %1728 = vmatpush.bf16.msrb.mxu0 %v3500_v18  ;;  %4714 = vst [vmem:[#allocation28_spill] sm:$0xff] %v3807_v40 }
  0xde   : >> { %v3764_v44 = vadd.f32 %v539_v48, %v467_v32  ;;  %v3766_v38 = vadd.f32 %v779_v31, %v665_v51  ;;  %v3778_v31 = vsel %vm350_vm3, %v881_v1, %v884_v53  ;;  %v1282_v51 = vshll.u32 %v3785_v26, 16 }
  0xdf   : >> { %v890_v1 = vshll.u32 %v3678_v6, 16  ;;  %v3852_v6 = vld [vmem:[%s3459_s5 + $0xa8] sm:$0xff] }
  0xe1   : >> { %v781_v45 = vpop.f32.mrf.mxu3 }
  0xe2   : >> { %v542_v24 = vpop.f32.mrf.mxu1 }
  0xe3   : >> { %v627_v18 = vpop.f32.mrf.mxu2 }
  0xe4   : >> { %v666_v11 = vadd.f32 %v627_v18, %v3687_v39  ;;  %v1279_v39 = vshrl.u32 %v3742_v29, 16 }
  0xe5   : >> { %2801 = vmatmul.msk.bf16.gmra.mxu1 %vm414_vm2, %v3769_v25  ;;  %v470_v48 = vpop.f32.mrf.mxu0 }
  0xe6   : >> { %2858 = vmatmul.msk.bf16.gmra.mxu3 %vm414_vm2, %v3772_v42  ;;  %v3782_v63 = vadd.f32 %v542_v24, %v470_v48  ;;  %v3787_v52 = vadd.f32 %v781_v45, %v666_v11  ;;  %v886_v45 = vshrl.u32 %v3645_v34, 16  ;;  %v1281_v48 = vor.u32 %v1279_v39, %v1277_v47 }
  0xe7   : >> { %v1284_v11 = vrot.slane %v1282_v51, 1 }
  0xe8   : >> { %2791 = vmatmul.msk.bf16.gmra.mxu0 %vm414_vm2, %v3778_v31  ;;  %2848 = vmatmul.msk.bf16.gmra.mxu2 %vm414_vm2, %v3710_v8 }
  0xe9   : >> { %v784_v27 = vpop.f32.mrf.mxu3  ;;  %v3810_v41 = vsel %vm350_vm3, %v1281_v48, %v1284_v11 }
  0xea   : >> { %v544_v32 = vpop.f32.mrf.mxu1  ;;  %4715 = vst [vmem:[#allocation29_spill] sm:$0xff] %v3810_v41 }
  0xeb   : >> { %v630_v5 = vpop.f32.mrf.mxu2 }
  0xec   : >> { %v667_v24 = vadd.f32 %v630_v5, %v3706_v13  ;;  %v888_v13 = vor.u32 %v886_v45, %v884_v53  ;;  %v892_v5 = vrot.slane %v890_v1, 1  ;;  %v3823_v53 = vld [vmem:[%s3459_s5 + $0xa0] sm:$0xff] }
  0xed   : >> { %v472_v3 = vpop.f32.mrf.mxu0  ;;  %v1289_v45 = vshll.u32 %v3823_v53, 16 }
  0xee   : >> { %v3801_v18 = vadd.f32 %v544_v32, %v472_v3  ;;  %v3803_v43 = vadd.f32 %v784_v27, %v667_v24  ;;  %v3816_v27 = vsel %vm350_vm3, %v888_v13, %v892_v5 }
  0xf1   : >> { %v786_v22 = vpop.f32.mrf.mxu3 }
  0xf2   : >> { %v547_v23 = vpop.f32.mrf.mxu1 }
  0xf3   : >> { %v632_v32 = vpop.f32.mrf.mxu2 }
  0xf4   : >> { %v668_v39 = vadd.f32 %v632_v32, %v3722_v28  ;;  %v1286_v28 = vshrl.u32 %v3785_v26, 16  ;;  %v1291_v32 = vrot.slane %v1289_v45, 1 }
  0xf5   : >> { %2802 = vmatmul.msk.bf16.gmra.mxu1 %vm414_vm2, %v3807_v40  ;;  %v475_v47 = vpop.f32.mrf.mxu0 }
  0xf6   : >> { %2859 = vmatmul.msk.bf16.gmra.mxu3 %vm414_vm2, %v3810_v41  ;;  %v3820_v35 = vadd.f32 %v547_v23, %v475_v47  ;;  %v3825_v51 = vadd.f32 %v786_v22, %v668_v39  ;;  %v1288_v22 = vor.u32 %v1286_v28, %v1284_v11  ;;  %v1417_v41 = vrot.slane %v3710_v8, 1 }
  0xf8   : >> { %2792 = vmatmul.msk.bf16.gmra.mxu0 %vm414_vm2, %v3816_v27  ;;  %2849 = vmatmul.msk.bf16.gmra.mxu2 %vm414_vm2, %v3742_v29  ;;  %v3840_v0 = vsel %vm350_vm3, %v1288_v22, %v1291_v32 }
  0xf9   : >> { %v789_v3 = vpop.f32.mrf.mxu3  ;;  %4716 = vst [vmem:[#allocation30_spill] sm:$0xff] %v3840_v0 }
  0xfa   : >> { %v549_v24 = vpop.f32.mrf.mxu1 }
  0xfb   : >> { %v635_v1 = vpop.f32.mrf.mxu2 }
  0xfc   : >> { %v669_v23 = vadd.f32 %v635_v1, %v3739_v62  ;;  %v3844_v1 = vor.u32 %v894_v20, %v892_v5  ;;  %v3084_v20 = vld [vmem:[%s3459_s5 + $0x80] sm:$0xf0]  ;;  %v3085_v5 = vld [vmem:[%s3459_s5 + $0x80] sm:$0xe] }
  0xfd   : >> { %v477_v48 = vpop.f32.mrf.mxu0 }
  0xfe   : >> { %v3834_v13 = vadd.f32 %v549_v24, %v477_v48  ;;  %v3836_v47 = vadd.f32 %v789_v3, %v669_v23  ;;  %v1296_v23 = vshll.u32 %v3852_v6, 16 }
 0x100   : >> { %v1298_v50 = vrot.slane %v1296_v23, 1 }
 0x101   : >> { %v791_v39 = vpop.f32.mrf.mxu3 }
 0x102   : >> { %v552_v21 = vpop.f32.mrf.mxu1 }
 0x103   : >> { %v637_v62 = vpop.f32.mrf.mxu2 }
 0x104   : >> { %v670_v11 = vadd.f32 %v637_v62, %v3764_v44  ;;  %v1293_v44 = vshrl.u32 %v3823_v53, 16 }
 0x105   : >> { %2803 = vmatmul.msk.bf16.gmra.mxu1 %vm414_vm2, %v3797_v58  ;;  %v480_v24 = vpop.f32.mrf.mxu0 }
 0x106   : >> { %2860 = vmatmul.msk.bf16.gmra.mxu3 %vm414_vm2, %v3840_v0  ;;  %v3849_v3 = vadd.f32 %v552_v21, %v480_v24  ;;  %v3854_v28 = vadd.f32 %v791_v39, %v670_v11  ;;  %v3086_v39 = vor.u32 %v3085_v5, %v3084_v20  ;;  %v1295_v11 = vor.u32 %v1293_v44, %v1291_v32  ;;  %v3884_v5 = vld [vmem:[%s3459_s5 + $0xb0] sm:$0xff] }
 0x108   : >> { %2793 = vmatmul.msk.bf16.gmra.mxu0 %vm414_vm2, %v3844_v1  ;;  %2850 = vmatmul.msk.bf16.gmra.mxu2 %vm414_vm2, %v3785_v26  ;;  %v1416_v40 = vrot.slane %v3086_v39, 1  ;;  %v3871_v4 = vsel %vm350_vm3, %v1295_v11, %v1298_v50  ;;  %v3902_v11 = vld [vmem:[%s3459_s5 + $0xb8] sm:$0xff]  }
 0x109   : >> { %v794_v45 = vpop.f32.mrf.mxu3 }
 0x10a   : >> { %v554_v48 = vpop.f32.mrf.mxu1  ;;  %v3877_v32 = vsel %vm573_vm4, %v1416_v40, %v1417_v41 }
 0x10b   : >> { %v640_v21 = vpop.f32.mrf.mxu2  ;;  %4717 = vst [vmem:[#allocation31_spill] sm:$0xff] %v3877_v32 }
 0x10c   : >> { %v671_v62 = vadd.f32 %v640_v21, %v3782_v63 }
 0x10d   : >> { %v482_v22 = vpop.f32.mrf.mxu0 }
 0x10e   : >> { %v3865_v24 = vadd.f32 %v554_v48, %v482_v22  ;;  %v3867_v58 = vadd.f32 %v794_v45, %v671_v62 }
 0x111   : >> { %v796_v0 = vpop.f32.mrf.mxu3 }
 0x112   : >> { %v1046_v34 = vpop.f32.mrf.mxu1 }
 0x113   : >> { %v642_v63 = vpop.f32.mrf.mxu2 }
 0x114   : >> { %v672_v48 = vadd.f32 %v642_v63, %v3801_v18  ;;  %v3905_v63 = vld [vmem:[%s3459_s5 + $0xb8] sm:$0xf]  }
 0x115   : >> { %2875 = vmatmul.msk.bf16.vlgmr.msra.gmra.mxu1 %vm414_vm2, %v3609_v56  ;;  %v933_v20 = vpop.f32.mrf.mxu0 }
 0x116   : >> { %2861 = vmatmul.msk.bf16.gmra.mxu3 %vm414_vm2, %v3871_v4  ;;  %2264 = vmatpush.bf16.msra.mxu1 %v3755_v46  ;;  %v973_v45 = vadd.f32 %v933_v20, %v3766_v38  ;;  %v3886_v44 = vadd.f32 %v796_v0, %v672_v48  ;;  %v1300_v46 = vshrl.u32 %v3852_v6, 16  ;;  %v1303_v38 = vshll.u32 %v3884_v5, 16 }
 0x118   : >> { %2867 = vmatmul.msk.bf16.vlgmr.msra.gmra.mxu0 %vm414_vm2, %v3877_v32  ;;  %v3890_v18 = vadd.f32 %v1046_v34, %v973_v45  ;;  %2851 = vmatmul.msk.bf16.gmra.mxu2 %vm414_vm2, %v3823_v53  ;;  %v1302_v62 = vor.u32 %v1300_v46, %v1298_v50  ;;  %v1305_v39 = vrot.slane %v1303_v38, 1  ;;  %v1419_v45 = vrot.slane %v3742_v29, 1 }
 0x119   : >> { %v799_v56 = vpop.f32.mrf.mxu3  ;;  %2156 = vmatpush.bf16.msra.mxu0 %v3669_v37 }
 0x11a   : >> { %v1048_v40 = vpop.f32.mrf.mxu1  ;;  %v3911_v32 = vsel %vm350_vm3, %v1302_v62, %v1305_v39 }
 0x11b   : >> { %v645_v0 = vpop.f32.mrf.mxu2 }
 0x11c   : >> { %v673_v23 = vadd.f32 %v645_v0, %v3820_v35 }
 0x11d   : >> { %v935_v21 = vpop.f32.mrf.mxu0 }
 0x11e   : >> { %v974_v22 = vadd.f32 %v935_v21, %v3787_v52  ;;  %v3899_v34 = vadd.f32 %v799_v56, %v673_v23  ;;  %v3917_v56 = vsel %vm573_vm4, %v1417_v41, %v1419_v45  ;;  %v1307_v41 = vshrl.u32 %v3884_v5, 16 }
 0x11f   : >> { %4718 = vst [vmem:[#allocation32_spill] sm:$0xff] %v3917_v56 }
 0x120   : >> { %v3907_v37 = vadd.f32 %v1048_v40, %v974_v22  ;;  %v1309_v62 = vor.u32 %v1307_v41, %v1305_v39 }
 0x121   : >> { %v801_v48 = vpop.f32.mrf.mxu3 }
 0x122   : >> { %v1051_v20 = vpop.f32.mrf.mxu1 }
 0x123   : >> { %v647_v50 = vpop.f32.mrf.mxu2 }
 0x124   : >> { %v674_v52 = vadd.f32 %v647_v50, %v3834_v13  ;;  %v1311_v13 = vshll.u32 %v3902_v11, 16 }
 0x125   : >> { %2876 = vmatmul.msk.bf16.gmra.mxu1 %vm414_vm2, %v3630_v9  ;;  %v938_v35 = vpop.f32.mrf.mxu0 }
 0x126   : >> { %2862 = vmatmul.msk.bf16.gmra.mxu3 %vm414_vm2, %v3911_v32  ;;  %v975_v40 = vadd.f32 %v938_v35, %v3803_v43  ;;  %v3922_v46 = vadd.f32 %v801_v48, %v674_v52  ;;  %v1313_v48 = vrot.slane %v1311_v13, 1 }
 0x128   : >> { %2868 = vmatmul.msk.bf16.gmra.mxu0 %vm414_vm2, %v3917_v56  ;;  %v3926_v0 = vadd.f32 %v1051_v20, %v975_v40  ;;  %2852 = vmatmul.msk.bf16.gmra.mxu2 %vm414_vm2, %v3852_v6  ;;  %v1421_v40 = vrot.slane %v3785_v26, 1  ;;  %v3940_v56 = vsel %vm350_vm3, %v1309_v62, %v1313_v48 }
 0x129   : >> { %v804_v38 = vpop.f32.mrf.mxu3 }
 0x12a   : >> { %v1053_v9 = vpop.f32.mrf.mxu1  ;;  %v3946_v39 = vsel %vm573_vm4, %v1419_v45, %v1421_v40 }
 0x12b   : >> { %v650_v23 = vpop.f32.mrf.mxu2 }
 0x12c   : >> { %v675_v21 = vadd.f32 %v650_v23, %v3849_v3 }
 0x12d   : >> { %v940_v43 = vpop.f32.mrf.mxu0 }
 0x12e   : >> { %v976_v22 = vadd.f32 %v940_v43, %v3825_v51  ;;  %v3934_v50 = vadd.f32 %v804_v38, %v675_v21  ;;  %v1315_v43 = vshrl.u32 %v3902_v11, 16 }
 0x130   : >> { %v3936_v52 = vadd.f32 %v1053_v9, %v976_v22  ;;  %v3230_v22 = vld [vmem:[%s3459_s5 + $0xb8] sm:$0x70] }
 0x131   : >> { %v806_v20 = vpop.f32.mrf.mxu3 }
 0x132   : >> { %v1056_v35 = vpop.f32.mrf.mxu1 }
 0x133   : >> { %v652_v3 = vpop.f32.mrf.mxu2 }
 0x134   : >> { %v676_v23 = vadd.f32 %v652_v3, %v3865_v24 }
 0x135   : >> { %2877 = vmatmul.msk.bf16.gmra.mxu1 %vm414_vm2, %v3657_v55  ;;  %v943_v51 = vpop.f32.mrf.mxu0 }
 0x136   : >> { %2863 = vmatmul.msk.bf16.gmra.mxu3 %vm414_vm2, %v3940_v56  ;;  %v977_v38 = vadd.f32 %v943_v51, %v3836_v47  ;;  %v3951_v9 = vadd.f32 %v806_v20, %v676_v23  ;;  %v1423_v23 = vrot.slane %v3823_v53, 1  ;;  %v3968_v51 = vor.u32 %v1315_v43, %v1313_v48 }
 0x138   : >> { %2869 = vmatmul.msk.bf16.gmra.mxu0 %vm414_vm2, %v3946_v39  ;;  %v3955_v55 = vadd.f32 %v1056_v35, %v977_v38  ;;  %2853 = vmatmul.msk.bf16.gmra.mxu2 %vm414_vm2, %v3884_v5 }
 0x139   : >> { %v809_v41 = vpop.f32.mrf.mxu3 }
 0x13a   : >> { %v1058_v13 = vpop.f32.mrf.mxu1 }
 0x13b   : >> { %v655_v24 = vpop.f32.mrf.mxu2 }
 0x13c   : >> { %v677_v45 = vadd.f32 %v655_v24, %v3684_v17 }
 0x13d   : >> { %v945_v21 = vpop.f32.mrf.mxu0 }
 0x13e   : >> { %v978_v47 = vadd.f32 %v945_v21, %v3854_v28  ;;  %v3963_v62 = vadd.f32 %v809_v41, %v677_v45  ;;  %v3974_v28 = vsel %vm573_vm4, %v1421_v40, %v1423_v23  ;;  %v3977_v41 = vor.u32 %v3230_v22, %v3905_v63 }
 0x140   : >> { %v3965_v3 = vadd.f32 %v1058_v13, %v978_v47 }
 0x141   : >> { %v811_v20 = vpop.f32.mrf.mxu3 }
 0x142   : >> { %v1061_v35 = vpop.f32.mrf.mxu1 }
 0x143   : >> { %v657_v17 = vpop.f32.mrf.mxu2 }
 0x144   : >> { %v678_v38 = vadd.f32 %v657_v17, %v3699_v49  ;;  %v1425_v17 = vrot.slane %v3852_v6, 1 }
 0x145   : >> { %2878 = vmatmul.msk.bf16.gmra.mxu1 %vm414_vm2, %v3702_v57  ;;  %v948_v24 = vpop.f32.mrf.mxu0 }
 0x146   : >> { %2864 = vmatmul.msk.bf16.gmra.mxu3 %vm414_vm2, %v3968_v51  ;;  %v979_v13 = vadd.f32 %v948_v24, %v3867_v58  ;;  %v3982_v48 = vadd.f32 %v811_v20, %v678_v38 }
 0x148   : >> { %2870 = vmatmul.msk.bf16.gmra.mxu0 %vm414_vm2, %v3974_v28  ;;  %v3986_v45 = vadd.f32 %v1061_v35, %v979_v13  ;;  %2854 = vmatmul.msk.bf16.gmra.mxu2 %vm414_vm2, %v3977_v41 }
 0x149   : >> { %v814_v57 = vpop.f32.mrf.mxu3 }
 0x14a   : >> { %v1063_v49 = vpop.f32.mrf.mxu1 }
 0x14b   : >> { %v660_v40 = vpop.f32.mrf.mxu2 }
 0x14c   : >> { %v679_v63 = vadd.f32 %v660_v40, %v3717_v14  ;;  %v4001_v14 = vsel %vm573_vm4, %v1423_v23, %v1425_v17 }
 0x14d   : >> { %v950_v21 = vpop.f32.mrf.mxu0 }
 0x14e   : >> { %v980_v43 = vadd.f32 %v950_v21, %v3886_v44  ;;  %v3992_v47 = vadd.f32 %v814_v57, %v679_v63 }
 0x150   : >> { %v3994_v22 = vadd.f32 %v1063_v49, %v980_v43 }
 0x151   : >> { %v816_v58 = vpop.f32.mrf.mxu3 }
 0x152   : >> { %v1066_v20 = vpop.f32.mrf.mxu1 }
 0x153   : >> { %v662_v35 = vpop.f32.mrf.mxu2 }
 0x154   : >> { %v680_v38 = vadd.f32 %v662_v35, %v3732_v59 }
 0x155   : >> { %2879 = vmatmul.msk.bf16.gmra.mxu1 %vm414_vm2, %v3735_v16  ;;  %v953_v24 = vpop.f32.mrf.mxu0 }
 0x156   : >> { %2891 = vmatmul.msk.bf16.vlgmr.msrb.gmra.mxu3 %vm414_vm2, %v3600_v36  ;;  %v981_v44 = vadd.f32 %v953_v24, %v3899_v34  ;;  %v4006_v13 = vadd.f32 %v816_v58, %v680_v38  ;;  %v1427_v58 = vrot.slane %v3884_v5, 1 }
 0x158   : >> { %2871 = vmatmul.msk.bf16.gmra.mxu0 %vm414_vm2, %v4001_v14  ;;  %v4010_v49 = vadd.f32 %v1066_v20, %v981_v44  ;;  %2883 = vmatmul.msk.bf16.vlgmr.msrb.gmra.mxu2 %vm414_vm2, %v3526_v10  ;;  %v4025_v38 = vsel %vm573_vm4, %v1425_v17, %v1427_v58 }
 0x159   : >> { %v1354_v57 = vpop.f32.mrf.mxu3 }
 0x15a   : >> { %v1068_v16 = vpop.f32.mrf.mxu1 }
 0x15b   : >> { %v1200_v59 = vpop.f32.mrf.mxu2 }
 0x15c   : >> { %v1240_v40 = vadd.f32 %v1200_v59, %v3890_v18 }
 0x15d   : >> { %v955_v23 = vpop.f32.mrf.mxu0 }
 0x15e   : >> { %v982_v36 = vadd.f32 %v955_v23, %v3922_v46  ;;  %v4016_v63 = vadd.f32 %v1354_v57, %v1240_v40  ;;  %v4045_v40 = vrot.slane %v3902_v11, 1 }
 0x160   : >> { %v4018_v21 = vadd.f32 %v1068_v16, %v982_v36 }
 0x161   : >> { %v1356_v34 = vpop.f32.mrf.mxu3 }
 0x162   : >> { %v1071_v43 = vpop.f32.mrf.mxu1 }
 0x163   : >> { %v1202_v20 = vpop.f32.mrf.mxu2 }
 0x164   : >> { %v1241_v10 = vadd.f32 %v1202_v20, %v3907_v37 }
 0x165   : >> { %2880 = vmatmul.msk.bf16.gmra.mxu1 %vm414_vm2, %v3778_v31  ;;  %v958_v35 = vpop.f32.mrf.mxu0 }
 0x166   : >> { %2892 = vmatmul.msk.bf16.gmra.mxu3 %vm414_vm2, %v3621_v60  ;;  %v983_v18 = vadd.f32 %v958_v35, %v3934_v50  ;;  %v4030_v46 = vadd.f32 %v1356_v34, %v1241_v10 }
 0x168   : >> { %2872 = vmatmul.msk.bf16.gmra.mxu0 %vm414_vm2, %v4025_v38  ;;  %v4034_v44 = vadd.f32 %v1071_v43, %v983_v18  ;;  %2884 = vmatmul.msk.bf16.gmra.mxu2 %vm414_vm2, %v3541_v33 }
 0x169   : >> { %v1359_v24 = vpop.f32.mrf.mxu3 }
 0x16a   : >> { %v1073_v31 = vpop.f32.mrf.mxu1 }
 0x16b   : >> { %v1205_v37 = vpop.f32.mrf.mxu2 }
 0x16c   : >> { %v1242_v57 = vadd.f32 %v1205_v37, %v3926_v0  ;;  %v4052_v0 = vsel %vm573_vm4, %v1427_v58, %v4045_v40 }
 0x16d   : >> { %v960_v17 = vpop.f32.mrf.mxu0 }
 0x16e   : >> { %v984_v60 = vadd.f32 %v960_v17, %v3951_v9  ;;  %v4040_v16 = vadd.f32 %v1359_v24, %v1242_v57 }
 0x170   : >> { %v4042_v59 = vadd.f32 %v1073_v31, %v984_v60 }
 0x171   : >> { %v1361_v50 = vpop.f32.mrf.mxu3 }
 0x172   : >> { %v1076_v23 = vpop.f32.mrf.mxu1 }
 0x173   : >> { %v1207_v36 = vpop.f32.mrf.mxu2 }
 0x174   : >> { %v1243_v34 = vadd.f32 %v1207_v36, %v3936_v52 }
 0x175   : >> { %2881 = vmatmul.msk.bf16.gmra.mxu1 %vm414_vm2, %v3816_v27  ;;  %v963_v33 = vpop.f32.mrf.mxu0 }
 0x176   : >> { %2893 = vmatmul.msk.bf16.gmra.mxu3 %vm414_vm2, %v3642_v15  ;;  %v985_v9 = vadd.f32 %v963_v33, %v3963_v62  ;;  %v4057_v43 = vadd.f32 %v1361_v50, %v1243_v34 }
 0x178   : >> { %2873 = vmatmul.msk.bf16.gmra.mxu0 %vm414_vm2, %v4052_v0  ;;  %v4061_v27 = vadd.f32 %v1076_v23, %v985_v9  ;;  %2885 = vmatmul.msk.bf16.gmra.mxu2 %vm414_vm2, %v3565_v61 }
 0x179   : >> { %v1364_v11 = vpop.f32.mrf.mxu3 }
 0x17a   : >> { %v1078_v20 = vpop.f32.mrf.mxu1 }
 0x17b   : >> { %v1210_v52 = vpop.f32.mrf.mxu2 }
 0x17c   : >> { %v1244_v35 = vadd.f32 %v1210_v52, %v3955_v55 }
 0x17d   : >> { %v965_v58 = vpop.f32.mrf.mxu0 }
 0x17e   : >> { %v986_v15 = vadd.f32 %v965_v58, %v3982_v48  ;;  %v4067_v10 = vadd.f32 %v1364_v11, %v1244_v35 }
 0x180   : >> { %v4069_v18 = vadd.f32 %v1078_v20, %v986_v15 }
 0x181   : >> { %v1366_v62 = vpop.f32.mrf.mxu3 }
 0x182   : >> { %v1081_v24 = vpop.f32.mrf.mxu1 }
 0x183   : >> { %v1212_v31 = vpop.f32.mrf.mxu2 }
 0x184   : >> { %v1245_v17 = vadd.f32 %v1212_v31, %v3965_v3  ;;  %v4719_v31 = vld [vmem:[#allocation24_spill] sm:$0xff] }
 0x185   : >> { %2882 = vmatmul.msk.bf16.gmra.mxu1 %vm414_vm2, %v3844_v1  ;;  %v968_v37 = vpop.f32.mrf.mxu0 }
 0x186   : >> { %2894 = vmatmul.msk.bf16.gmra.mxu3 %vm414_vm2, %v3690_v2  ;;  %v987_v61 = vadd.f32 %v968_v37, %v3992_v47  ;;  %v4077_v55 = vadd.f32 %v1366_v62, %v1245_v17 }
 0x188   : >> { %2874 = vmatmul.msk.bf16.gmra.mxu0 %vm414_vm2, %v4045_v40  ;;  %v4081_v57 = vadd.f32 %v1081_v24, %v987_v61  ;;  %2886 = vmatmul.msk.bf16.gmra.mxu2 %vm414_vm2, %v3581_v7 }
 0x189   : >> { %v1369_v48 = vpop.f32.mrf.mxu3 }
 0x18a   : >> { %v1083_v60 = vpop.f32.mrf.mxu1 }
 0x18b   : >> { %v1215_v1 = vpop.f32.mrf.mxu2 }
 0x18c   : >> { %v1246_v3 = vadd.f32 %v1215_v1, %v3986_v45 }
 0x18d   : >> { %v970_v50 = vpop.f32.mrf.mxu0 }
 0x18e   : >> { %v988_v2 = vadd.f32 %v970_v50, %v4006_v13  ;;  %v4087_v23 = vadd.f32 %v1369_v48, %v1246_v3  ;;  %v4720_v48 = vld [vmem:[#allocation29_spill] sm:$0xff]  ;;  %v4721_v50 = vld [vmem:[#allocation28_spill] sm:$0xff] }
 0x190   : >> { %v4089_v36 = vadd.f32 %v1083_v60, %v988_v2 }
 0x191   : >> { %v1371_v47 = vpop.f32.mrf.mxu3 }
 0x192   : >> { %v4091_v33 = vpop.f32.mrf.mxu1 }
 0x193   : >> { %v1217_v34 = vpop.f32.mrf.mxu2 }
 0x194   : >> { %v1247_v9 = vadd.f32 %v1217_v34, %v3994_v22 }
 0x195   : >> { %2907 = vmatmul.msk.bf16.vlgmr.msrb.gmra.mxu1 %vm414_vm2, %v3728_v12  ;;  %v1467_v7 = vpop.f32.mrf.mxu0 }
 0x196   : >> { %2895 = vmatmul.msk.bf16.gmra.mxu3 %vm414_vm2, %v3725_v19  ;;  %v4099_v45 = vadd.f32 %v1467_v7, %v4016_v63  ;;  %v1401_v13 = vadd.f32 %v1371_v47, %v1247_v9  ;;  %v4722_v47 = vld [vmem:[#allocation25_spill] sm:$0xff] }
 0x198   : >> { %2899 = vmatmul.msk.bf16.vlgmr.msrb.gmra.mxu0 %vm414_vm2, %v3695_v30  ;;  %2887 = vmatmul.msk.bf16.gmra.mxu2 %vm414_vm2, %v3603_v54 }
 0x199   : >> { %v1374_v11 = vpop.f32.mrf.mxu3 }
 0x19a   : >> { %v4103_v20 = vpop.f32.mrf.mxu1 }
 0x19b   : >> { %v1220_v12 = vpop.f32.mrf.mxu2 }
 0x19c   : >> { %v1248_v22 = vadd.f32 %v1220_v12, %v4010_v49 }
 0x19d   : >> { %v1469_v52 = vpop.f32.mrf.mxu0 }
 0x19e   : >> { %v4109_v58 = vadd.f32 %v1469_v52, %v4030_v46  ;;  %v4111_v19 = vadd.f32 %v1374_v11, %v1248_v22  ;;  %v4723_v22 = vld [vmem:[#allocation30_spill] sm:$0xff] }
 0x1a1   : >> { %v1376_v63 = vpop.f32.mrf.mxu3 }
 0x1a2   : >> { %v4113_v35 = vpop.f32.mrf.mxu1 }
 0x1a3   : >> { %v1222_v30 = vpop.f32.mrf.mxu2 }
 0x1a4   : >> { %v1249_v15 = vadd.f32 %v1222_v30, %v4018_v21  ;;  %v4724_v30 = vld [vmem:[#allocation27_spill] sm:$0xff] }
 0x1a5   : >> { %2908 = vmatmul.msk.bf16.gmra.mxu1 %vm414_vm2, %v3772_v42  ;;  %v1472_v62 = vpop.f32.mrf.mxu0 }
 0x1a6   : >> { %2896 = vmatmul.msk.bf16.gmra.mxu3 %vm414_vm2, %v3769_v25  ;;  %v4121_v54 = vadd.f32 %v1472_v62, %v4040_v16  ;;  %v4123_v49 = vadd.f32 %v1376_v63, %v1249_v15 }
 0x1a8   : >> { %2900 = vmatmul.msk.bf16.gmra.mxu0 %vm414_vm2, %v3710_v8  ;;  %2888 = vmatmul.msk.bf16.gmra.mxu2 %vm414_vm2, %v4719_v31 }
 0x1a9   : >> { %v1379_v46 = vpop.f32.mrf.mxu3 }
 0x1aa   : >> { %v4127_v24 = vpop.f32.mrf.mxu1 }
 0x1ab   : >> { %v1225_v42 = vpop.f32.mrf.mxu2 }
 0x1ac   : >> { %v1250_v21 = vadd.f32 %v1225_v42, %v4034_v44 }
 0x1ad   : >> { %v1474_v37 = vpop.f32.mrf.mxu0 }
 0x1ae   : >> { %v4133_v25 = vadd.f32 %v1474_v37, %v4057_v43  ;;  %v4135_v16 = vadd.f32 %v1379_v46, %v1250_v21  ;;  %v4725_v46 = vld [vmem:[#allocation26_spill] sm:$0xff] }
 0x1b1   : >> { %v1381_v17 = vpop.f32.mrf.mxu3 }
 0x1b2   : >> { %v4137_v61 = vpop.f32.mrf.mxu1 }
 0x1b3   : >> { %v1227_v8 = vpop.f32.mrf.mxu2 }
 0x1b4   : >> { %v1251_v60 = vadd.f32 %v1227_v8, %v4042_v59 }
 0x1b5   : >> { %2909 = vmatmul.msk.bf16.gmra.mxu1 %vm414_vm2, %v4720_v48  ;;  %v1477_v1 = vpop.f32.mrf.mxu0  ;;  %v4187_v48 = vld [vmem:[%s3459_s5 + $0xc0] sm:$0xff]  }
 0x1b6   : >> { %2897 = vmatmul.msk.bf16.gmra.mxu3 %vm414_vm2, %v4721_v50  ;;  %v4145_v44 = vadd.f32 %v1477_v1, %v4067_v10  ;;  %v4147_v43 = vadd.f32 %v1381_v17, %v1251_v60 }
 0x1b8   : >> { %2901 = vmatmul.msk.bf16.gmra.mxu0 %vm414_vm2, %v3742_v29  ;;  %2889 = vmatmul.msk.bf16.gmra.mxu2 %vm414_vm2, %v4722_v47 }
 0x1b9   : >> { %v1384_v3 = vpop.f32.mrf.mxu3 }
 0x1ba   : >> { %v4151_v2 = vpop.f32.mrf.mxu1 }
 0x1bb   : >> { %v1230_v34 = vpop.f32.mrf.mxu2 }
 0x1bc   : >> { %v1252_v59 = vadd.f32 %v1230_v34, %v4061_v27 }
 0x1bd   : >> { %v1479_v9 = vpop.f32.mrf.mxu0 }
 0x1be   : >> { %v4157_v7 = vadd.f32 %v1479_v9, %v4077_v55  ;;  %v4159_v10 = vadd.f32 %v1384_v3, %v1252_v59 }
 0x1c1   : >> { %v1386_v11 = vpop.f32.mrf.mxu3 }
 0x1c2   : >> { %v4161_v12 = vpop.f32.mrf.mxu1 }
 0x1c3   : >> { %v1232_v29 = vpop.f32.mrf.mxu2 }
 0x1c4   : >> { %v1253_v52 = vadd.f32 %v1232_v29, %v4069_v18 }
 0x1c5   : >> { %2910 = vmatmul.msk.bf16.gmra.mxu1 %vm414_vm2, %v4723_v22  ;;  %v1482_v63 = vpop.f32.mrf.mxu0 }
 0x1c6   : >> { %2898 = vmatmul.msk.bf16.gmra.mxu3 %vm414_vm2, %v4724_v30  ;;  %v4169_v27 = vadd.f32 %v1482_v63, %v4087_v23  ;;  %v4171_v55 = vadd.f32 %v1386_v11, %v1253_v52  ;;  %v4214_v11 = vld [vmem:[%s3459_s5 + $0xc8] sm:$0xff] }
 0x1c8   : >> { %2902 = vmatmul.msk.bf16.gmra.mxu0 %vm414_vm2, %v3785_v26  ;;  %2890 = vmatmul.msk.bf16.gmra.mxu2 %vm414_vm2, %v4725_v46 }
 0x1c9   : >> { %v1389_v15 = vpop.f32.mrf.mxu3 }
 0x1ca   : >> { %v4175_v62 = vpop.f32.mrf.mxu1 }
 0x1cb   : >> { %v1235_v18 = vpop.f32.mrf.mxu2 }
 0x1cc   : >> { %v1254_v31 = vadd.f32 %v1235_v18, %v4081_v57 }
 0x1cd   : >> { %v1484_v42 = vpop.f32.mrf.mxu0 }
 0x1ce   : >> { %v4180_v21 = vadd.f32 %v1484_v42, %v1401_v13  ;;  %v4182_v37 = vadd.f32 %v1389_v15, %v1254_v31  ;;  %v4241_v42 = vld [vmem:[%s3459_s5 + $0xd0] sm:$0xff] }
 0x1d1   : >> { %v1391_v23 = vpop.f32.mrf.mxu3 }
 0x1d2   : >> { %v4184_v17 = vpop.f32.mrf.mxu1 }
 0x1d3   : >> { %v1237_v26 = vpop.f32.mrf.mxu2 }
 0x1d4   : >> { %v1255_v8 = vadd.f32 %v1237_v26, %v4089_v36 }
 0x1d5   : >> { %2911 = vmatmul.msk.bf16.gmra.mxu1 %vm414_vm2, %v3871_v4  ;;  %v1487_v60 = vpop.f32.mrf.mxu0  ;;  %v4726_v4 = vld [vmem:[#allocation31_spill] sm:$0xff] }
 0x1d6   : >> { %2965 = vmatmul.msk.bf16.vlgmr.msra.gmra.mxu3 %vm414_vm2, %v4187_v48  ;;  %v4195_v57 = vadd.f32 %v1487_v60, %v4111_v19  ;;  %v4197_v13 = vadd.f32 %v1391_v23, %v1255_v8 }
 0x1d8   : >> { %2903 = vmatmul.msk.bf16.gmra.mxu0 %vm414_vm2, %v3823_v53  ;;  %2915 = vmatmul.msk.bf16.vlgmr.msra.gmra.mxu2 %vm414_vm2, %v4726_v4 }
 0x1d9   : >> { %v1665_v1 = vpop.f32.mrf.mxu3 }
 0x1da   : >> { %v4201_v50 = vpop.f32.mrf.mxu1 }
 0x1db   : >> { %v1616_v36 = vpop.f32.mrf.mxu2 }
 0x1dc   : >> { %v1617_v47 = vadd.f32 %v1616_v36, %v4091_v33 }
 0x1dd   : >> { %v1489_v3 = vpop.f32.mrf.mxu0 }
 0x1de   : >> { %v4207_v34 = vadd.f32 %v1489_v3, %v4123_v49  ;;  %v4209_v19 = vadd.f32 %v1665_v1, %v1617_v47 }
 0x1e1   : >> { %v1667_v59 = vpop.f32.mrf.mxu3 }
 0x1e2   : >> { %v4211_v9 = vpop.f32.mrf.mxu1 }
 0x1e3   : >> { %v1618_v53 = vpop.f32.mrf.mxu2 }
 0x1e4   : >> { %v1619_v29 = vadd.f32 %v1618_v53, %v4103_v20  ;;  %v3089_v53 = vld [vmem:[%s3459_s5 + $0xc0] sm:$0xe] }
 0x1e5   : >> { %2912 = vmatmul.msk.bf16.gmra.mxu1 %vm414_vm2, %v3911_v32  ;;  %v1492_v22 = vpop.f32.mrf.mxu0  ;;  %v4727_v32 = vld [vmem:[#allocation32_spill] sm:$0xff] }
 0x1e6   : >> { %2966 = vmatmul.msk.bf16.gmra.mxu3 %vm414_vm2, %v4214_v11  ;;  %v4222_v33 = vadd.f32 %v1492_v22, %v4135_v16  ;;  %v4224_v49 = vadd.f32 %v1667_v59, %v1619_v29  ;;  %v2071_v29 = vshll.u32 %v4187_v48, 16 }
 0x1e8   : >> { %2904 = vmatmul.msk.bf16.gmra.mxu0 %vm414_vm2, %v3852_v6  ;;  %2916 = vmatmul.msk.bf16.gmra.mxu2 %vm414_vm2, %v4727_v32  ;;  %v2073_v32 = vrot.slane %v2071_v29, 1 }
 0x1e9   : >> { %v1670_v52 = vpop.f32.mrf.mxu3 }
 0x1ea   : >> { %v4228_v63 = vpop.f32.mrf.mxu1 }
 0x1eb   : >> { %v1621_v30 = vpop.f32.mrf.mxu2 }
 0x1ec   : >> { %v1622_v20 = vadd.f32 %v1621_v30, %v4113_v35 }
 0x1ed   : >> { %v1494_v15 = vpop.f32.mrf.mxu0 }
 0x1ee   : >> { %v4234_v46 = vadd.f32 %v1494_v15, %v4147_v43  ;;  %v4236_v16 = vadd.f32 %v1670_v52, %v1622_v20 }
 0x1f1   : >> { %v1672_v18 = vpop.f32.mrf.mxu3 }
 0x1f2   : >> { %v4238_v31 = vpop.f32.mrf.mxu1 }
 0x1f3   : >> { %v1623_v6 = vpop.f32.mrf.mxu2 }
 0x1f4   : >> { %v1624_v26 = vadd.f32 %v1623_v6, %v4127_v24  ;;  %v2219_v6 = vrot.slane %v4214_v11, 1 }
 0x1f5   : >> { %2913 = vmatmul.msk.bf16.gmra.mxu1 %vm414_vm2, %v3940_v56  ;;  %v1497_v23 = vpop.f32.mrf.mxu0 }
 0x1f6   : >> { %2967 = vmatmul.msk.bf16.gmra.mxu3 %vm414_vm2, %v4241_v42  ;;  %v4249_v35 = vadd.f32 %v1497_v23, %v4159_v10  ;;  %v4251_v43 = vadd.f32 %v1672_v18, %v1624_v26 }
 0x1f8   : >> { %2905 = vmatmul.msk.bf16.gmra.mxu0 %vm414_vm2, %v3884_v5  ;;  %2917 = vmatmul.msk.bf16.gmra.mxu2 %vm414_vm2, %v3946_v39  ;;  %v4268_v5 = vld [vmem:[%s3459_s5 + $0xd8] sm:$0xff] }
 0x1f9   : >> { %v1675_v8 = vpop.f32.mrf.mxu3 }
 0x1fa   : >> { %v4255_v60 = vpop.f32.mrf.mxu1 }
 0x1fb   : >> { %v1626_v56 = vpop.f32.mrf.mxu2 }
 0x1fc   : >> { %v1627_v1 = vadd.f32 %v1626_v56, %v4137_v61 }
 0x1fd   : >> { %v1499_v24 = vpop.f32.mrf.mxu0 }
 0x1fe   : >> { %v4261_v10 = vadd.f32 %v1499_v24, %v4171_v55  ;;  %v4263_v4 = vadd.f32 %v1675_v8, %v1627_v1  ;;  %v3088_v55 = vld [vmem:[%s3459_s5 + $0xc0] sm:$0xf0] }
 0x1ff   : >> { %v4300_v1 = vld [vmem:[%s3459_s5 + $0xe0] sm:$0xff] }
 0x201   : >> { %v1677_v36 = vpop.f32.mrf.mxu3 }
 0x202   : >> { %v4265_v3 = vpop.f32.mrf.mxu1 }
 0x203   : >> { %v1628_v47 = vpop.f32.mrf.mxu2 }
 0x204   : >> { %v1629_v59 = vadd.f32 %v1628_v47, %v4151_v2  ;;  %v3090_v2 = vor.u32 %v3089_v53, %v3088_v55 }
 0x205   : >> { %2914 = vmatmul.msk.bf16.gmra.mxu1 %vm414_vm2, %v3968_v51  ;;  %v1502_v39 = vpop.f32.mrf.mxu0 }
 0x206   : >> { %2968 = vmatmul.msk.bf16.gmra.mxu3 %vm414_vm2, %v4268_v5  ;;  %v4276_v61 = vadd.f32 %v1502_v39, %v4182_v37  ;;  %v4280_v22 = vadd.f32 %v1677_v36, %v1629_v59  ;;  %v2069_v37 = vshrl.u32 %v4187_v48, 16  ;;  %v2218_v18 = vrot.slane %v3090_v2, 1 }
 0x208   : >> { %2906 = vmatmul.msk.bf16.gmra.mxu0 %vm414_vm2, %v3977_v41  ;;  %2918 = vmatmul.msk.bf16.gmra.mxu2 %vm414_vm2, %v3974_v28  ;;  %v2075_v41 = vshll.u32 %v4214_v11, 16  ;;  %v2074_v8 = vor.u32 %v2073_v32, %v2069_v37  ;;  %v2220_v48 = vsel %vm573_vm4, %v2218_v18, %v2219_v6  ;;  %v2221_v37 = vrot.slane %v4241_v42, 1 }
 0x209   : >> { %v1680_v51 = vpop.f32.mrf.mxu3  ;;  %v2082_v32 = vshll.u32 %v4241_v42, 16 }
 0x20a   : >> { %v4285_v52 = vpop.f32.mrf.mxu1  ;;  %v2077_v24 = vrot.slane %v2075_v41, 1 }
 0x20b   : >> { %v1631_v30 = vpop.f32.mrf.mxu2 }
 0x20c   : >> { %v1632_v20 = vadd.f32 %v1631_v30, %v4161_v12  ;;  %v2078_v39 = vsel %vm350_vm3, %v2074_v8, %v2077_v24  ;;  %v4328_v8 = vld [vmem:[%s3459_s5 + $0xe8] sm:$0xff] }
 0x20d   : >> { %v1504_v15 = vpop.f32.mrf.mxu0 }
 0x20e   : >> { %v4294_v23 = vadd.f32 %v1504_v15, %v4197_v13  ;;  %v4296_v26 = vadd.f32 %v1680_v51, %v1632_v20 }
 0x211   : >> { %v1682_v28 = vpop.f32.mrf.mxu3 }
 0x212   : >> { %v1795_v56 = vpop.f32.mrf.mxu1 }
 0x213   : >> { %v1633_v12 = vpop.f32.mrf.mxu2 }
 0x214   : >> { %v1634_v36 = vadd.f32 %v1633_v12, %v4175_v62 }
 0x215   : >> { %2983 = vmatmul.msk.bf16.vlgmr.msra.gmra.mxu1 %vm414_vm2, %v2220_v48  ;;  %v1730_v47 = vpop.f32.mrf.mxu0 }
 0x216   : >> { %2969 = vmatmul.msk.bf16.gmra.mxu3 %vm414_vm2, %v4300_v1  ;;  %v1770_v13 = vadd.f32 %v1730_v47, %v4209_v19  ;;  %v4308_v59 = vadd.f32 %v1682_v28, %v1634_v36  ;;  %v2079_v19 = vshrl.u32 %v4214_v11, 16 }
 0x218   : >> { %2974 = vmatmul.msk.bf16.vlgmr.msra.gmra.mxu0 %vm414_vm2, %v2078_v39  ;;  %v4311_v53 = vadd.f32 %v1795_v56, %v1770_v13  ;;  %2919 = vmatmul.msk.bf16.gmra.mxu2 %vm414_vm2, %v4001_v14  ;;  %v2222_v14 = vsel %vm573_vm4, %v2219_v6, %v2221_v37  ;;  %v2081_v28 = vor.u32 %v2079_v19, %v2077_v24  ;;  %v2223_v13 = vrot.slane %v4268_v5, 1 }
 0x219   : >> { %v1685_v55 = vpop.f32.mrf.mxu3 }
 0x21a   : >> { %v1797_v29 = vpop.f32.mrf.mxu1 }
 0x21b   : >> { %v1636_v62 = vpop.f32.mrf.mxu2 }
 0x21c   : >> { %v1637_v51 = vadd.f32 %v1636_v62, %v4184_v17  ;;  %v2084_v17 = vrot.slane %v2082_v32, 1 }
 0x21d   : >> { %v1732_v2 = vpop.f32.mrf.mxu0 }
 0x21e   : >> { %v1771_v30 = vadd.f32 %v1732_v2, %v4224_v49  ;;  %v4320_v15 = vadd.f32 %v1685_v55, %v1637_v51  ;;  %v2085_v49 = vsel %vm350_vm3, %v2081_v28, %v2084_v17  ;;  %v2086_v55 = vshrl.u32 %v4241_v42, 16 }
 0x220   : >> { %v4324_v18 = vadd.f32 %v1797_v29, %v1771_v30  ;;  %v4355_v30 = vld [vmem:[%s3459_s5 + $0xf0] sm:$0xff] }
 0x221   : >> { %v4322_v20 = vpop.f32.mrf.mxu3 }
 0x222   : >> { %v1800_v41 = vpop.f32.mrf.mxu1 }
 0x223   : >> { %v4331_v11 = vpop.f32.mrf.mxu2 }
 0x225   : >> { %2984 = vmatmul.msk.bf16.gmra.mxu1 %vm414_vm2, %v2222_v14  ;;  %v1735_v56 = vpop.f32.mrf.mxu0 }
 0x226   : >> { %2970 = vmatmul.msk.bf16.gmra.mxu3 %vm414_vm2, %v4328_v8  ;;  %v1772_v48 = vadd.f32 %v1735_v56, %v4236_v16  ;;  %v2089_v16 = vshll.u32 %v4268_v5, 16  ;;  %v4370_v56 = vld [vmem:[%s3459_s5 + $0xf8] sm:$0xff]  }
 0x228   : >> { %2975 = vmatmul.msk.bf16.gmra.mxu0 %vm414_vm2, %v2085_v49  ;;  %v4338_v6 = vadd.f32 %v1800_v41, %v1772_v48  ;;  %2920 = vmatmul.msk.bf16.gmra.mxu2 %vm414_vm2, %v4025_v38  ;;  %v2224_v38 = vsel %vm573_vm4, %v2221_v37, %v2223_v13  ;;  %v2091_v32 = vrot.slane %v2089_v16, 1  ;;  %v3233_v49 = vld [vmem:[%s3459_s5 + $0xf8] sm:$0xf]   ;;  %v3236_v48 = vld [vmem:[%s3459_s5 + $0xf8] sm:$0x70]  ;;  %s3035_s5 = sshll.u32 %s3263_s20, 5 }
 0x229   : >> { %v1690_v12 = vpop.f32.mrf.mxu3  ;;  %s4604_s9 = scalar_lea.vmem %s3362_s13, %s3035_s5  ;;  %s283_s20 = sadd.s32 1, %s3263_s20  }
 0x22a   : >> { %v1802_v24 = vpop.f32.mrf.mxu1  ;;  %p280_p11 = scmp.ge.s32.totalorder %s283_s20, 63  }
 0x22b   : >> { %v1641_v36 = vpop.f32.mrf.mxu2  ;;  %s3002_s11 = sshll.u32 (%p280_p11), %s3313_s19, 1  ;;  %s2558_s28 = sshll.u32 (%p280_p11), %s3429_s14, 4  ;;  %s2559_s28 = int_to_ptr.vmem [resolvable:$true] %s2558_s28 }
 0x22c   : >> { %v1642_v47 = vadd.f32 %v1641_v36, %v4211_v9  ;;  %v2088_v9 = vor.u32 %v2086_v55, %v2084_v17  ;;  %v2093_v36 = vshrl.u32 %v4268_v5, 16  ;;  %s2556_s23 = scalar_lea.hbm (%p280_p11), %s4663_s4, %s3002_s11  ;;  %s2543_s20 = scalar_lea.sflag (%p280_p11), [#allocation3], %s196_s27 }
 0x22d   : >> { %v1737_v39 = vpop.f32.mrf.mxu0  ;;  %s2560_s29 = sshll.u32 (%p280_p11), %s2556_s23, 4  ;;  %s3186_s6 = scalar_lea.hbm (%p280_p11), %s4663_s4, 4  ;;  %s2561_s29 = int_to_ptr.hbm [resolvable:$true] %s2560_s29 }
 0x22e   : >> { %v1773_v29 = vadd.f32 %v1737_v39, %v4251_v43  ;;  %v4347_v62 = vadd.f32 %v1690_v12, %v1642_v47  ;;  %v2092_v41 = vsel %vm350_vm3, %v2088_v9, %v2091_v32  ;;  %v2096_v39 = vshll.u32 %v4300_v1, 16  ;;  %s3180_s30 = sshra.s32 (%p280_p11), %s2561_s29, 4  ;;  %s3181_s30 = int_to_ptr.hbm [resolvable:$true] %s3180_s30 }
 0x22f   : >> { %v2095_v9 = vor.u32 %v2093_v36, %v2091_v32  ;;  %v2100_v36 = vshrl.u32 %v4300_v1, 16  ;;  %s3182_s10 = scalar_lea.hbm (%p280_p11), %s3181_s30, 2  ;;  %p3187_p1 = scmp.lt.s32.totalorder (%p280_p11), %s3181_s30, %s4663_s4 }
 0x230   : >> { %v4351_v2 = vadd.f32 %v1802_v24, %v1773_v29  ;;  %v2225_v24 = vrot.slane %v4300_v1, 1  ;;  %p3183_p12 = scmp.ne.s32.totalorder (%p280_p11), %s3181_s30, %s3182_s10  ;;  %p3188_p2 = scmp.lt.s32.totalorder (%p280_p11), %s3186_s6, %s3182_s10 }
 0x231   : >> { %v4349_v51 = vpop.f32.mrf.mxu3 }
 0x232   : >> { %v1805_v19 = vpop.f32.mrf.mxu1  ;;  %p3184_p13 = pnand (%p280_p11), %p3183_p12, %p3330_p5  ;;  %p3189_p3 = por (%p280_p11), %p3188_p2, %p3187_p1 }
 0x233   : >> { %v4358_v42 = vpop.f32.mrf.mxu2 }
 0x234   : > { %p3185_p0 = pneg (%p280_p11), %p3184_p13 }
 0x235   : >> { %2985 = vmatmul.msk.bf16.gmra.mxu1 %vm414_vm2, %v2224_v38  ;;  %v1740_v43 = vpop.f32.mrf.mxu0  ;;  %v2226_v38 = vsel %vm573_vm4, %v2223_v13, %v2225_v24 }
 0x236   : >> { %2971 = vmatmul.msk.bf16.gmra.mxu3 %vm414_vm2, %v4355_v30  ;;  %v1774_v14 = vadd.f32 %v1740_v43, %v4263_v4  ;;  %v2098_v43 = vrot.slane %v2096_v39, 1  ;;  %p3190_p4 = pnand (%p280_p11), %p3189_p3, %p3185_p0 }
 0x238   : >> { %2976 = vmatmul.msk.bf16.gmra.mxu0 %vm414_vm2, %v2092_v41  ;;  %v4365_v28 = vadd.f32 %v1805_v19, %v1774_v14  ;;  %2921 = vmatmul.msk.bf16.gmra.mxu2 %vm414_vm2, %v4052_v0  ;;  %v3234_v41 = vor.u32 %v3236_v48, %v3233_v49  ;;  %v2099_v14 = vsel %vm350_vm3, %v2095_v9, %v2098_v43 }
 0x239   : >> { %v1695_v37 = vpop.f32.mrf.mxu3 }
 0x23a   : >> { %v1807_v17 = vpop.f32.mrf.mxu1 }
 0x23b   : >> { %v1646_v12 = vpop.f32.mrf.mxu2 }
 0x23c   : >> { %v1647_v4 = vadd.f32 %v1646_v12, %v4238_v31  ;;  %v2227_v12 = vrot.slane %v4328_v8, 1 }
 0x23d   : >> { %v1742_v47 = vpop.f32.mrf.mxu0 }
 0x23e   : >> { %v1775_v55 = vadd.f32 %v1742_v47, %v4280_v22  ;;  %v4379_v16 = vadd.f32 %v1695_v37, %v1647_v4  ;;  %v2103_v4 = vshll.u32 %v4328_v8, 16 }
 0x240   : >> { %v4383_v0 = vadd.f32 %v1807_v17, %v1775_v55 }
 0x241   : >> { %v4381_v29 = vpop.f32.mrf.mxu3 }
 0x242   : >> { %v1810_v19 = vpop.f32.mrf.mxu1 }
 0x243   : >> { %v4387_v31 = vpop.f32.mrf.mxu2 }
 0x245   : >> { %2986 = vmatmul.msk.bf16.gmra.mxu1 %vm414_vm2, %v2226_v38  ;;  %v1745_v5 = vpop.f32.mrf.mxu0  ;;  %v2102_v38 = vor.u32 %v2100_v36, %v2098_v43 }
 0x246   : >> { %2972 = vmatmul.msk.bf16.gmra.mxu3 %vm414_vm2, %v3234_v41  ;;  %v1776_v22 = vadd.f32 %v1745_v5, %v4296_v26  ;;  %v1639_v5 = vadd.f32 %v4331_v11, %v4201_v50 }
 0x248   : >> { %2977 = vmatmul.msk.bf16.gmra.mxu0 %vm414_vm2, %v2099_v14  ;;  %v4393_v17 = vadd.f32 %v1810_v19, %v1776_v22  ;;  %2922 = vmatmul.msk.bf16.gmra.mxu2 %vm414_vm2, %v4045_v40  ;;  %v2228_v40 = vsel %vm573_vm4, %v2225_v24, %v2227_v12  ;;  %v1714_v43 = vadd.f32 %v4322_v20, %v1639_v5 }
 0x249   : >> { %v1700_v37 = vpop.f32.mrf.mxu3  ;;  %v1644_v5 = vadd.f32 %v4358_v42, %v4228_v63 }
 0x24a   : >> { %v1812_v13 = vpop.f32.mrf.mxu1 }
 0x24b   : >> { %v1651_v32 = vpop.f32.mrf.mxu2 }
 0x24c   : >> { %v1652_v49 = vadd.f32 %v1651_v32, %v4265_v3  ;;  %v2105_v3 = vrot.slane %v2103_v4, 1 }
 0x24d   : >> { %v1747_v48 = vpop.f32.mrf.mxu0 }
 0x24e   : >> { %v1777_v26 = vadd.f32 %v1747_v48, %v4308_v59  ;;  %v4402_v47 = vadd.f32 %v1700_v37, %v1652_v49  ;;  %v2106_v41 = vsel %vm350_vm3, %v2102_v38, %v2105_v3  ;;  %v2229_v49 = vrot.slane %v4355_v30, 1 }
 0x24f   : >> { %v2107_v48 = vshrl.u32 %v4328_v8, 16 }
 0x250   : >> { %v4406_v55 = vadd.f32 %v1812_v13, %v1777_v26 }
 0x251   : >> { %v4404_v39 = vpop.f32.mrf.mxu3  ;;  %v2109_v20 = vor.u32 %v2107_v48, %v2105_v3 }
 0x252   : >> { %v1815_v19 = vpop.f32.mrf.mxu1 }
 0x253   : >> { %v4410_v9 = vpop.f32.mrf.mxu2 }
 0x255   : >> { %2987 = vmatmul.msk.bf16.gmra.mxu1 %vm414_vm2, %v2228_v40  ;;  %v1750_v1 = vpop.f32.mrf.mxu0 }
 0x256   : >> { %v1778_v59 = vadd.f32 %v1750_v1, %v4320_v15  ;;  %v2110_v15 = vshll.u32 %v4355_v30, 16 }
 0x258   : >> { %2978 = vmatmul.msk.bf16.gmra.mxu0 %vm414_vm2, %v2106_v41  ;;  %v4417_v22 = vadd.f32 %v1815_v19, %v1778_v59  ;;  %v2230_v19 = vsel %vm573_vm4, %v2227_v12, %v2229_v49  ;;  %v2112_v40 = vrot.slane %v2110_v15, 1 }
 0x259   : >> { %v2009_v14 = vpop.f32.mrf.mxu3 }
 0x25a   : >> { %v1817_v24 = vpop.f32.mrf.mxu1  ;;  %v2113_v8 = vsel %vm350_vm3, %v2109_v20, %v2112_v40 }
 0x25b   : >> { %v1860_v37 = vpop.f32.mrf.mxu2 }
 0x25c   : >> { %v1900_v32 = vadd.f32 %v1860_v37, %v4311_v53 }
 0x25d   : >> { %v1752_v13 = vpop.f32.mrf.mxu0 }
 0x25e   : >> { %v1779_v36 = vadd.f32 %v1752_v13, %v1714_v43  ;;  %v4424_v50 = vadd.f32 %v2009_v14, %v1900_v32  ;;  %v2231_v13 = vrot.slane %v4370_v56, 1  ;;  %v2118_v32 = vshll.u32 %v4370_v56, 16 }
 0x260   : >> { %v4426_v4 = vadd.f32 %v1817_v24, %v1779_v36  ;;  %v1716_v24 = vadd.f32 %v4349_v51, %v1644_v5 }
 0x261   : >> { %v2011_v11 = vpop.f32.mrf.mxu3 }
 0x262   : >> { %v1820_v26 = vpop.f32.mrf.mxu1 }
 0x263   : >> { %v1862_v53 = vpop.f32.mrf.mxu2 }
 0x264   : >> { %v1901_v1 = vadd.f32 %v1862_v53, %v4324_v18 }
 0x265   : >> { %2988 = vmatmul.msk.bf16.gmra.mxu1 %vm414_vm2, %v2230_v19  ;;  %v1755_v38 = vpop.f32.mrf.mxu0 }
 0x266   : >> { %v1780_v41 = vadd.f32 %v1755_v38, %v4347_v62  ;;  %v4433_v59 = vadd.f32 %v2011_v11, %v1901_v1  ;;  %v2114_v62 = vshrl.u32 %v4355_v30, 16  ;;  %v2232_v11 = vsel %vm573_vm4, %v2229_v49, %v2231_v13 }
 0x267   : >> { %v1649_v1 = vadd.f32 %v4387_v31, %v4255_v60 }
 0x268   : >> { %2979 = vmatmul.msk.bf16.gmra.mxu0 %vm414_vm2, %v2113_v8  ;;  %v4438_v3 = vadd.f32 %v1820_v26, %v1780_v41  ;;  %v2116_v51 = vor.u32 %v2114_v62, %v2112_v40  ;;  %v2120_v26 = vrot.slane %v2118_v32, 1 }
 0x269   : >> { %v2014_v12 = vpop.f32.mrf.mxu3  ;;  %v1718_v41 = vadd.f32 %v4381_v29, %v1649_v1 }
 0x26a   : >> { %v1822_v14 = vpop.f32.mrf.mxu1  ;;  %v2121_v30 = vsel %vm350_vm3, %v2116_v51, %v2120_v26 }
 0x26b   : >> { %v1865_v43 = vpop.f32.mrf.mxu2 }
 0x26c   : >> { %v1902_v18 = vadd.f32 %v1865_v43, %v4338_v6  ;;  %v2122_v43 = vshrl.u32 %v4370_v56, 16 }
 0x26d   : >> { %v1757_v37 = vpop.f32.mrf.mxu0 }
 0x26e   : >> { %v1781_v48 = vadd.f32 %v1757_v37, %v1716_v24  ;;  %v4445_v63 = vadd.f32 %v2014_v12, %v1902_v18  ;;  %v2124_v18 = vor.u32 %v2122_v43, %v2120_v26 }
 0x270   : >> { %v4447_v15 = vadd.f32 %v1822_v14, %v1781_v48 }
 0x271   : >> { %v2016_v42 = vpop.f32.mrf.mxu3 }
 0x272   : >> { %v1825_v36 = vpop.f32.mrf.mxu1 }
 0x273   : >> { %v1867_v6 = vpop.f32.mrf.mxu2 }
 0x274   : >> { %v1903_v20 = vadd.f32 %v1867_v6, %v4351_v2 }
 0x275   : >> { %2989 = vmatmul.msk.bf16.gmra.mxu1 %vm414_vm2, %v2232_v11  ;;  %v1760_v19 = vpop.f32.mrf.mxu0 }
 0x276   : >> { %v1782_v53 = vadd.f32 %v1760_v19, %v4379_v16  ;;  %v4454_v38 = vadd.f32 %v2016_v42, %v1903_v20 }
 0x278   : >> { %2980 = vmatmul.msk.bf16.gmra.mxu0 %vm414_vm2, %v2121_v30  ;;  %v4459_v40 = vadd.f32 %v1825_v36, %v1782_v53 }
 0x279   : >> { %v2019_v49 = vpop.f32.mrf.mxu3 }
 0x27a   : >> { %v1827_v8 = vpop.f32.mrf.mxu1 }
 0x27b   : >> { %v1870_v5 = vpop.f32.mrf.mxu2 }
 0x27c   : >> { %v1904_v2 = vadd.f32 %v1870_v5, %v4365_v28  ;;  %v1654_v28 = vadd.f32 %v4410_v9, %v4285_v52  ;;  %v4728_v52 = vld [vmem:[#allocation5_spill] sm:$0xff] }
 0x27d   : >> { %v1762_v12 = vpop.f32.mrf.mxu0  ;;  %v4485_v9 = vperm.slane %v4728_v52, 0 }
 0x27e   : >> { %v1783_v14 = vadd.f32 %v1762_v12, %v1718_v41  ;;  %v4463_v24 = vadd.f32 %v2019_v49, %v1904_v2 }
 0x280   : >> { %v4466_v37 = vadd.f32 %v1827_v8, %v1783_v14 }
 0x281   : >> { %v2021_v16 = vpop.f32.mrf.mxu3 }
 0x282   : >> { %v1830_v60 = vpop.f32.mrf.mxu1 }
 0x283   : >> { %v1872_v31 = vpop.f32.mrf.mxu2 }
 0x284   : >> { %v1905_v29 = vadd.f32 %v1872_v31, %v4383_v0 }
 0x285   : >> { %2990 = vmatmul.msk.bf16.gmra.mxu1 %vm414_vm2, %v2231_v13  ;;  %v1765_v62 = vpop.f32.mrf.mxu0  ;;  %v1720_v13 = vadd.f32 %v4404_v39, %v1654_v28 }
 0x286   : >> { %v1784_v32 = vadd.f32 %v1765_v62, %v4402_v47  ;;  %v4471_v48 = vadd.f32 %v2021_v16, %v1905_v29 }
 0x288   : >> { %2981 = vmatmul.msk.bf16.gmra.mxu0 %vm414_vm2, %v2124_v18  ;;  %v4476_v42 = vadd.f32 %v1830_v60, %v1784_v32  ;;  %v1527_v18 = vadd.f32 %v4485_v9, %v4109_v58 }
 0x289   : >> { %v2024_v56 = vpop.f32.mrf.mxu3 }
 0x28a   : >> { %v1832_v36 = vpop.f32.mrf.mxu1  ;;  %v1543_v32 = vmax.f32 %v1527_v18, 0.0 }
 0x28b   : >> { %v1875_v11 = vpop.f32.mrf.mxu2 }
 0x28c   : >> { %v1906_v26 = vadd.f32 %v1875_v11, %v4393_v17  ;;  %v1526_v17 = vadd.f32 %v4485_v9, %v4099_v45 }
 0x28d   : >> { %v1767_v51 = vpop.f32.mrf.mxu0 }
 0x28e   : >> { %v1785_v0 = vadd.f32 %v1767_v51, %v1720_v13  ;;  %v4480_v6 = vadd.f32 %v2024_v56, %v1906_v26  ;;  %v1542_v12 = vmax.f32 %v1526_v17, 0.0 }
 0x290   : >> { %v4482_v47 = vadd.f32 %v1832_v36, %v1785_v0 }
 0x291   : >> { %v2026_v20 = vpop.f32.mrf.mxu3 }
 0x292   : >> { %v2266_v19 = vpop.f32.mrf.mxu1 }
 0x293   : >> { %v1877_v30 = vpop.f32.mrf.mxu2 }
 0x294   : >> { %v1907_v53 = vadd.f32 %v1877_v30, %v4406_v55  ;;  %v1529_v30 = vadd.f32 %v4485_v9, %v4133_v25 }
 0x295   : >> { %v2158_v1 = vpop.f32.mrf.mxu0 }
 0x296   : >> { %v2198_v39 = vadd.f32 %v2158_v1, %v4424_v50  ;;  %v4489_v49 = vadd.f32 %v2026_v20, %v1907_v53 }
 0x298   : >> { %v2306_v8 = vadd.f32 %v2266_v19, %v2198_v39 }
 0x299   : >> { %v2029_v16 = vpop.f32.mrf.mxu3 }
 0x29a   : >> { %v2268_v41 = vpop.f32.mrf.mxu1  ;;  %v2322_v5 = vadd.f32 %v2306_v8, %v4485_v9 }
 0x29b   : >> { %v1880_v14 = vpop.f32.mrf.mxu2 }
 0x29c   : >> { %v2338_v2 = vmax.f32 %v2322_v5, 0.0  ;;  %v1908_v43 = vadd.f32 %v1880_v14, %v4417_v22  ;;  %v1528_v22 = vadd.f32 %v4485_v9, %v4121_v54  ;;  %v1545_v54 = vmax.f32 %v1529_v30, 0.0 }
 0x29d   : >> { %v2160_v60 = vpop.f32.mrf.mxu0  ;;  %v1530_v5 = vadd.f32 %v4485_v9, %v4145_v44 }
 0x29e   : >> { %v2199_v55 = vadd.f32 %v2160_v60, %v4433_v59  ;;  %v2354_v31 = vmax.f32 %v1542_v12, %v2338_v2  ;;  %v4496_v50 = vadd.f32 %v2029_v16, %v1908_v43  ;;  %v1544_v58 = vmax.f32 %v1528_v22, 0.0 }
 0x29f   : >> { %v1546_v25 = vmax.f32 %v1530_v5, 0.0 }
 0x2a0   : >> { %v2307_v45 = vadd.f32 %v2268_v41, %v2199_v55 }
 0x2a2   : >> { %v2271_v62 = vpop.f32.mrf.mxu1  ;;  %v2323_v29 = vadd.f32 %v2307_v45, %v4485_v9 }
 0x2a4   : >> { %v2339_v28 = vmax.f32 %v2323_v29, 0.0 }
 0x2a5   : >> { %v2163_v56 = vpop.f32.mrf.mxu0 }
 0x2a6   : >> { %v2200_v36 = vadd.f32 %v2163_v56, %v4445_v63  ;;  %v2355_v13 = vmax.f32 %v1543_v32, %v2339_v28  ;;  %v1532_v56 = vadd.f32 %v4485_v9, %v4169_v27 }
 0x2a8   : >> { %v2308_v59 = vadd.f32 %v2271_v62, %v2200_v36  ;;  %v4504_v11 = vpack.c.bf16 %v2355_v13, %v2354_v31  ;;  %v1531_v31 = vadd.f32 %v4485_v9, %v4157_v7  ;;  %v1882_v36 = vpop.f32.mrf.mxu2 }
 0x2aa   : >> { %v2273_v51 = vpop.f32.mrf.mxu1  ;;  %v2324_v26 = vadd.f32 %v2308_v59, %v4485_v9  ;;  %v1547_v44 = vmax.f32 %v1531_v31, 0.0  ;;  %v1548_v59 = vmax.f32 %v1532_v56, 0.0 }
 0x2ac   : >> { %v2340_v0 = vmax.f32 %v2324_v26, 0.0  ;;  %v2031_v26 = vpop.f32.mrf.mxu3 }
 0x2ad   : >> { %v2165_v19 = vpop.f32.mrf.mxu0 }
 0x2ae   : >> { %v2201_v20 = vadd.f32 %v2165_v19, %v4454_v38  ;;  %v2356_v52 = vmax.f32 %v1544_v58, %v2340_v0 }
 0x2b0   : >> { %v2309_v63 = vadd.f32 %v2273_v51, %v2201_v20  ;;  %v1885_v27 = vpop.f32.mrf.mxu2 }
 0x2b2   : >> { %v2276_v53 = vpop.f32.mrf.mxu1  ;;  %v2325_v1 = vadd.f32 %v2309_v63, %v4485_v9 }
 0x2b4   : >> { %v2341_v39 = vmax.f32 %v2325_v1, 0.0 }
 0x2b5   : >> { %v2168_v17 = vpop.f32.mrf.mxu0 }
 0x2b6   : >> { %v2202_v8 = vadd.f32 %v2168_v17, %v4463_v24  ;;  %v2357_v41 = vmax.f32 %v1545_v54, %v2341_v39  ;;  %v2034_v17 = vpop.f32.mrf.mxu3 }
 0x2b8   : >> { %v2310_v12 = vadd.f32 %v2276_v53, %v2202_v8  ;;  %v4514_v2 = vpack.c.bf16 %v2357_v41, %v2356_v52  ;;  %v1534_v8 = vadd.f32 %v4485_v9, %v4195_v57  ;;  %v1910_v57 = vadd.f32 %v1885_v27, %v4438_v3 }
 0x2ba   : >> { %v2278_v38 = vpop.f32.mrf.mxu1  ;;  %v2326_v14 = vadd.f32 %v2310_v12, %v4485_v9 }
 0x2bc   : >> { %v2342_v16 = vmax.f32 %v2326_v14, 0.0 }
 0x2bd   : >> { %v2170_v43 = vpop.f32.mrf.mxu0 }
 0x2be   : >> { %v2203_v60 = vadd.f32 %v2170_v43, %v4471_v48  ;;  %v2358_v55 = vmax.f32 %v1546_v25, %v2342_v16  ;;  %v1887_v25 = vpop.f32.mrf.mxu2 }
 0x2c0   : >> { %v2311_v24 = vadd.f32 %v2278_v38, %v2203_v60  ;;  %v1550_v38 = vmax.f32 %v1534_v8, 0.0 }
 0x2c2   : >> { %v2281_v18 = vpop.f32.mrf.mxu1  ;;  %v2327_v45 = vadd.f32 %v2311_v24, %v4485_v9 }
 0x2c4   : >> { %v2343_v62 = vmax.f32 %v2327_v45, 0.0 }
 0x2c5   : >> { %v2173_v29 = vpop.f32.mrf.mxu0 }
 0x2c6   : >> { %v2204_v32 = vadd.f32 %v2173_v29, %v4480_v6  ;;  %v2359_v28 = vmax.f32 %v1547_v44, %v2343_v62  ;;  %v1533_v6 = vadd.f32 %v4485_v9, %v4180_v21  ;;  %v2059_v44 = vadd.f32 %v2034_v17, %v1910_v57 }
 0x2c7   : >> { %v1539_v57 = vadd.f32 %v4485_v9, %v4261_v10 }
 0x2c8   : >> { %v2312_v13 = vadd.f32 %v2281_v18, %v2204_v32  ;;  %v4524_v48 = vpack.c.bf16 %v2359_v28, %v2358_v55  ;;  %v1549_v63 = vmax.f32 %v1533_v6, 0.0  ;;  %v1535_v55 = vadd.f32 %v4485_v9, %v4207_v34  ;;  %v1890_v32 = vpop.f32.mrf.mxu2 }
 0x2ca   : >> { %v2283_v22 = vpop.f32.mrf.mxu1  ;;  %v2328_v7 = vadd.f32 %v2312_v13, %v4485_v9  ;;  %v1551_v45 = vmax.f32 %v1535_v55, 0.0  ;;  %v1911_v13 = vadd.f32 %v1887_v25, %v4447_v15 }
 0x2cc   : >> { %v2344_v51 = vmax.f32 %v2328_v7, 0.0 }
 0x2cd   : >> { %v2175_v58 = vpop.f32.mrf.mxu0 }
 0x2ce   : >> { %v2205_v0 = vadd.f32 %v2175_v58, %v4489_v49  ;;  %v2360_v19 = vmax.f32 %v1548_v59, %v2344_v51  ;;  %v1909_v49 = vadd.f32 %v1882_v36, %v4426_v4  ;;  %v2036_v4 = vpop.f32.mrf.mxu3  ;;  %v1536_v36 = vadd.f32 %v4485_v9, %v4222_v33 }
 0x2cf   : >> { %v1912_v33 = vadd.f32 %v1890_v32, %v4459_v40 }
 0x2d0   : >> { %v2313_v20 = vadd.f32 %v2283_v22, %v2205_v0  ;;  %v2058_v14 = vadd.f32 %v2031_v26, %v1909_v49  ;;  %v1552_v51 = vmax.f32 %v1536_v36, 0.0  ;;  %v2060_v26 = vadd.f32 %v2036_v4, %v1911_v13 }
 0x2d1   : >> { %v1538_v49 = vadd.f32 %v4485_v9, %v4249_v35  ;;  %v1555_v4 = vmax.f32 %v1539_v57, 0.0 }
 0x2d2   : >> { %v2286_v52 = vpop.f32.mrf.mxu1  ;;  %v2329_v30 = vadd.f32 %v2313_v20, %v4485_v9  ;;  %v1537_v20 = vadd.f32 %v4485_v9, %v4234_v46 }
 0x2d4   : >> { %v2345_v53 = vmax.f32 %v2329_v30, 0.0 }
 0x2d5   : >> { %v2178_v1 = vpop.f32.mrf.mxu0 }
 0x2d6   : >> { %v2206_v54 = vadd.f32 %v2178_v1, %v4496_v50  ;;  %v2361_v39 = vmax.f32 %v1549_v63, %v2345_v53  ;;  %v2039_v59 = vpop.f32.mrf.mxu3  ;;  %v1553_v63 = vmax.f32 %v1537_v20, 0.0 }
 0x2d7   : >> { %v2061_v53 = vadd.f32 %v2039_v59, %v1912_v33 }
 0x2d8   : >> { %v2314_v41 = vadd.f32 %v2286_v52, %v2206_v54  ;;  %v4535_v5 = vpack.c.bf16 %v2361_v39, %v2360_v19  ;;  %v1892_v52 = vpop.f32.mrf.mxu2 }
 0x2da   : >> { %v2288_v21 = vpop.f32.mrf.mxu1  ;;  %v2330_v12 = vadd.f32 %v2314_v41, %v4485_v9  ;;  %v1913_v41 = vadd.f32 %v1892_v52, %v4466_v37 }
 0x2dc   : >> { %v2346_v16 = vmax.f32 %v2330_v12, 0.0 }
 0x2dd   : >> { %v2180_v43 = vpop.f32.mrf.mxu0 }
 0x2de   : >> { %v2207_v60 = vadd.f32 %v2180_v43, %v2058_v14  ;;  %v2362_v50 = vmax.f32 %v1550_v38, %v2346_v16  ;;  %v2041_v54 = vpop.f32.mrf.mxu3  ;;  %v1554_v14 = vmax.f32 %v1538_v49, 0.0 }
 0x2df   : >> { %v2062_v25 = vadd.f32 %v2041_v54, %v1913_v41  ;;  %v4741_v54 = vld [vmem:[#allocation11_spill] sm:$0xff]  ;;  %v4747_v41 = vld [vmem:[#allocation13_spill] sm:$0xff] }
 0x2e0   : >> { %v2315_v31 = vadd.f32 %v2288_v21, %v2207_v60  ;;  %v1895_v40 = vpop.f32.mrf.mxu2 }
 0x2e1   : >> { %v1914_v35 = vadd.f32 %v1895_v40, %v4476_v42  ;;  %v4750_v40 = vld [vmem:[#allocation21_spill] sm:$0xff] }
 0x2e2   : >> { %v2291_v24 = vpop.f32.mrf.mxu1  ;;  %v2331_v18 = vadd.f32 %v2315_v31, %v4485_v9 }
 0x2e4   : >> { %v2347_v62 = vmax.f32 %v2331_v18, 0.0 }
 0x2e5   : >> { %v2183_v29 = vpop.f32.mrf.mxu0 }
 0x2e6   : >> { %v2208_v28 = vadd.f32 %v2183_v29, %v2059_v44  ;;  %v2363_v56 = vmax.f32 %v1551_v45, %v2347_v62  ;;  %v2044_v55 = vpop.f32.mrf.mxu3 }
 0x2e8   : >> { %v2316_v34 = vadd.f32 %v2291_v24, %v2208_v28  ;;  %v4545_v22 = vpack.c.bf16 %v2363_v56, %v2362_v50  ;;  %v2063_v24 = vadd.f32 %v2044_v55, %v1914_v35  ;;  %v1897_v18 = vpop.f32.mrf.mxu2  ;;  %v1540_v28 = vadd.f32 %v4485_v9, %v4276_v61 }
 0x2e9   : >> { %v1915_v56 = vadd.f32 %v1897_v18, %v4482_v47 }
 0x2ea   : >> { %v2293_v3 = vpop.f32.mrf.mxu1  ;;  %v2332_v7 = vadd.f32 %v2316_v34, %v4485_v9  ;;  %v1556_v34 = vmax.f32 %v1540_v28, 0.0 }
 0x2ec   : >> { %v2348_v58 = vmax.f32 %v2332_v7, 0.0 }
 0x2ed   : >> { %v2185_v0 = vpop.f32.mrf.mxu0 }
 0x2ee   : >> { %v2209_v19 = vadd.f32 %v2185_v0, %v2060_v26  ;;  %v2364_v6 = vmax.f32 %v1552_v51, %v2348_v58  ;;  %v2046_v13 = vpop.f32.mrf.mxu3  ;;  %v1541_v0 = vadd.f32 %v4485_v9, %v4294_v23  ;;  %v4729_v23 = vld [vmem:[#allocation7_spill] sm:$0xff] }
 0x2f0   : >> { %v2317_v15 = vadd.f32 %v2293_v3, %v2209_v19  ;;  %v2064_v3 = vadd.f32 %v2046_v13, %v1915_v56 }
 0x2f2   : >> { %v2296_v27 = vpop.f32.mrf.mxu1  ;;  %v2333_v30 = vadd.f32 %v2317_v15, %v4485_v9  ;;  %v4733_v15 = vld [vmem:[#allocation14_spill] sm:$0xff] }
 0x2f4   : >> { %v2349_v1 = vmax.f32 %v2333_v30, 0.0  ;;  %v4736_v30 = vld [vmem:[#allocation8_spill] sm:$0xff] }
 0x2f5   : >> { %v2188_v39 = vpop.f32.mrf.mxu0 }
 0x2f6   : >> { %v2210_v17 = vadd.f32 %v2188_v39, %v2061_v53  ;;  %v2365_v8 = vmax.f32 %v1553_v63, %v2349_v1  ;;  %v4738_v53 = vld [vmem:[#allocation17_spill] sm:$0xff] }
 0x2f8   : >> { %v2318_v46 = vadd.f32 %v2296_v27, %v2210_v17  ;;  %v2375_v21 = vpack.c.bf16 %v2365_v8, %v2364_v6  ;;  %v1557_v6 = vmax.f32 %v1541_v0, 0.0  ;;  %v4744_v17 = vld [vmem:[#allocation19_spill] sm:$0xff]  ;;  %v4745_v8 = vld [vmem:[#allocation18_spill] sm:$0xff] }
 0x2f9   : >> { %v4746_v49 = vpack.c.bf16 %v4744_v17, %v4745_v8 }
 0x2fa   : >> { %v2334_v12 = vadd.f32 %v2318_v46, %v4485_v9  ;;  %v2298_v38 = vpop.f32.mrf.mxu1  ;;  %v4748_v46 = vld [vmem:[#allocation12_spill] sm:$0xff] }
 0x2fc   : >> { %v2350_v16 = vmax.f32 %v2334_v12, 0.0  ;;  %v4751_v12 = vld [vmem:[#allocation20_spill] sm:$0xff] }
 0x2fd   : >> { %v2190_v43 = vpop.f32.mrf.mxu0 }
 0x2fe   : >> { %v2211_v60 = vadd.f32 %v2190_v43, %v2062_v25  ;;  %v2366_v50 = vmax.f32 %v1554_v14, %v2350_v16 }
 0x300   : >> { %v2319_v31 = vadd.f32 %v2298_v38, %v2211_v60  ;;  %v4752_v38 = vpack.c.bf16 %v4750_v40, %v4751_v12 }
 0x302   : >> { %v2335_v37 = vadd.f32 %v2319_v31, %v4485_v9  ;;  %v2301_v44 = vpop.f32.mrf.mxu1 }
 0x304   : >> { %v2351_v45 = vmax.f32 %v2335_v37, 0.0 }
 0x305   : >> { %v2193_v62 = vpop.f32.mrf.mxu0 }
 0x306   : >> { %v2212_v29 = vadd.f32 %v2193_v62, %v2063_v24  ;;  %v2367_v32 = vmax.f32 %v1555_v4, %v2351_v45 }
 0x308   : >> { %v2320_v36 = vadd.f32 %v2301_v44, %v2212_v29  ;;  %v2376_v10 = vpack.c.bf16 %v2367_v32, %v2366_v50 }
 0x30a   : >> { %v2336_v42 = vadd.f32 %v2320_v36, %v4485_v9  ;;  %v2303_v58 = vpop.f32.mrf.mxu1 }
 0x30c   : >> { %v2352_v7 = vmax.f32 %v2336_v42, 0.0 }
 0x30d   : >> { %v2195_v59 = vpop.f32.mrf.mxu0 }
 0x30e   : >> { %v2368_v51 = vmax.f32 %v1556_v34, %v2352_v7  ;;  %v2213_v26 = vadd.f32 %v2195_v59, %v2064_v3 }
 0x310   : >> { %v2321_v19 = vadd.f32 %v2303_v58, %v2213_v26 }
 0x312   : >> { %v2337_v61 = vadd.f32 %v2321_v19, %v4485_v9  ;;  %v4730_v9 = vld [vmem:[#allocation6_spill] sm:$0xff] }
 0x314   : >> { %v2353_v47 = vmax.f32 %v2337_v61, 0.0 }
 0x316   : >> { %v2369_v20 = vmax.f32 %v1557_v6, %v2353_v47 }
 0x318   : >> { %v2377_v33 = vpack.c.bf16 %v2369_v20, %v2368_v51 }
 0x31a   : >> { %v2393_v52 = vsel %vm573_vm4, %v2377_v33, 0 }
 0x31b   : >> { %2395 = vmatpush.bf16.msrb.mxu2 %v2393_v52  ;;  %2436 = vmatpush.bf16.msrb.mxu3 %v2393_v52 }
 0x31f   : >> { %2396 = vmatpush.bf16.msrb.mxu2 %v2376_v10  ;;  %2437 = vmatpush.bf16.msrb.mxu3 %v2376_v10 }
 0x323   : >> { %2397 = vmatpush.bf16.msrb.mxu2 %v2375_v21  ;;  %2438 = vmatpush.bf16.msrb.mxu3 %v2375_v21  ;;  %v4749_v21 = vpack.c.bf16 %v4747_v41, %v4748_v46 }
 0x327   : >> { %2398 = vmatpush.bf16.msrb.mxu2 %v4545_v22  ;;  %2439 = vmatpush.bf16.msrb.mxu3 %v4545_v22  ;;  %v4731_v22 = vpack.c.bf16 %v4729_v23, %v4730_v9 }
 0x32b   : >> { %2399 = vmatpush.bf16.msrb.mxu2 %v4535_v5  ;;  %2440 = vmatpush.bf16.msrb.mxu3 %v4535_v5  ;;  %v4732_v5 = vld [vmem:[#allocation15_spill] sm:$0xff] }
 0x32c   : >> { %v4734_v27 = vpack.c.bf16 %v4732_v5, %v4733_v15 }
 0x32f   : >> { %2400 = vmatpush.bf16.msrb.mxu2 %v4524_v48  ;;  %2441 = vmatpush.bf16.msrb.mxu3 %v4524_v48  ;;  %v4735_v48 = vld [vmem:[#allocation9_spill] sm:$0xff] }
 0x330   : >> { %v4737_v63 = vpack.c.bf16 %v4735_v48, %v4736_v30  ;;  %v2494_v48 = vld [vmem:[%s4604_s9 + $0x1c] sm:$0xf] }
 0x333   : >> { %2401 = vmatpush.bf16.msrb.mxu2 %v4514_v2  ;;  %2442 = vmatpush.bf16.msrb.mxu3 %v4514_v2  ;;  %v4739_v2 = vld [vmem:[#allocation16_spill] sm:$0xff] }
 0x334   : >> { %v4740_v1 = vpack.c.bf16 %v4738_v53, %v4739_v2 }
 0x337   : >> { %2402 = vmatpush.bf16.msrb.mxu2 %v4504_v11  ;;  %2443 = vmatpush.bf16.msrb.mxu3 %v4504_v11  ;;  %v4742_v11 = vld [vmem:[#allocation10_spill] sm:$0xff] }
 0x338   : >> { %v4743_v39 = vpack.c.bf16 %v4741_v54, %v4742_v11 }
 0x33a   : >> { %2991 = vmatmul.msk.bf16.vlgmr.msrb.gmra.mxu2 %vm2378_vm5, %v4731_v22  ;;  %2995 = vmatmul.msk.bf16.vlgmr.msrb.gmra.mxu3 %vm2378_vm5, %v4734_v27 }
 0x34a   : >> { %2992 = vmatmul.msk.bf16.gmra.mxu2 %vm2378_vm5, %v4737_v63  ;;  %2996 = vmatmul.msk.bf16.gmra.mxu3 %vm2378_vm5, %v4740_v1 }
 0x35a   : >> { %2993 = vmatmul.msk.bf16.gmra.mxu2 %vm2378_vm5, %v4743_v39  ;;  %2997 = vmatmul.msk.bf16.gmra.mxu3 %vm2378_vm5, %v4746_v49 }
 0x36a   : >> { %2994 = vmatmul.msk.bf16.gmra.mxu2 %vm2378_vm5, %v4749_v21  ;;  %2998 = vmatmul.msk.bf16.gmra.mxu3 %vm2378_vm5, %v4752_v38 }
 0x3bd   : >> { %v2404_v14 = vpop.f32.mrf.mxu2  ;;  %v2445_v25 = vpop.f32.mrf.mxu3 }
 0x3be   : >> { %v2465_v60 = vmax.f32 %v2404_v14, %v2445_v25 }
 0x3c0   : >> { %v2512_v10 = vmul.f32 %v2465_v60, %v2465_v60 }
 0x3c5   : >> { %v2406_v16 = vpop.f32.mrf.mxu2  ;;  %v2447_v43 = vpop.f32.mrf.mxu3 }
 0x3c6   : >> { %v2466_v50 = vmax.f32 %v2406_v16, %v2447_v43  ;;  %v4753_v16 = vld [vmem:[#allocation23_spill] sm:$0xff] }
 0x3c8   : >> { %v3059_v55 = vpack.c.bf16 %v2466_v50, %v2465_v60  ;;  %v2513_v36 = vmul.f32 %v2466_v50, %v2466_v50  ;;  %v2497_v13 = vadd.f32 %v2466_v50, %v2465_v60  ;;  %v4754_v50 = vld [vmem:[#allocation22_spill] sm:$0xff] }
 0x3ca   : >> { %3060 = vst [vmem:[%s4604_s9] sm:$0xff] %v3059_v55   ;;  %v2520_v59 = vadd.f32 %v2513_v36, %v2512_v10 }
 0x3cd   : >> { %v2409_v57 = vpop.f32.mrf.mxu2  ;;  %v2450_v35 = vpop.f32.mrf.mxu3 }
 0x3ce   : >> { %v2467_v4 = vmax.f32 %v2409_v57, %v2450_v35 }
 0x3d0   : >> { %v2514_v42 = vmul.f32 %v2467_v4, %v2467_v4  ;;  %v2498_v51 = vadd.f32 %v2497_v13, %v2467_v4 }
 0x3d2   : >> { %v2521_v0 = vadd.f32 %v2520_v59, %v2514_v42 }
 0x3d5   : >> { %v2411_v31 = vpop.f32.mrf.mxu2  ;;  %v2452_v37 = vpop.f32.mrf.mxu3 }
 0x3d6   : >> { %v2468_v24 = vmax.f32 %v2411_v31, %v2452_v37 }
 0x3d8   : >> { %v3064_v18 = vpack.c.bf16 %v2468_v24, %v2467_v4  ;;  %v2515_v26 = vmul.f32 %v2468_v24, %v2468_v24  ;;  %v2499_v19 = vadd.f32 %v2498_v51, %v2468_v24 }
 0x3da   : >> { %3091 = vst [vmem:[%s4604_s9 + $0x8] sm:$0xff] %v3064_v18   ;;  %v2522_v6 = vadd.f32 %v2521_v0, %v2515_v26 }
 0x3dd   : >> { %v2414_v45 = vpop.f32.mrf.mxu2  ;;  %v2455_v44 = vpop.f32.mrf.mxu3 }
 0x3de   : >> { %v2469_v32 = vmax.f32 %v2414_v45, %v2455_v44 }
 0x3e0   : >> { %v2516_v61 = vmul.f32 %v2469_v32, %v2469_v32  ;;  %v2500_v47 = vadd.f32 %v2499_v19, %v2469_v32 }
 0x3e2   : >> { %v2523_v33 = vadd.f32 %v2522_v6, %v2516_v61 }
 0x3e5   : >> { %v2416_v62 = vpop.f32.mrf.mxu2  ;;  %v2457_v29 = vpop.f32.mrf.mxu3 }
 0x3e6   : >> { %v2470_v28 = vmax.f32 %v2416_v62, %v2457_v29 }
 0x3e8   : >> { %v3069_v56 = vpack.c.bf16 %v2470_v28, %v2469_v32  ;;  %v2517_v20 = vmul.f32 %v2470_v28, %v2470_v28  ;;  %v2501_v52 = vadd.f32 %v2500_v47, %v2470_v28 }
 0x3ea   : >> { %3092 = vst [vmem:[%s4604_s9 + $0x10] sm:$0xff] %v3069_v56   ;;  %v2524_v15 = vadd.f32 %v2523_v33, %v2517_v20 }
 0x3ed   : >> { %v2419_v34 = vpop.f32.mrf.mxu2  ;;  %v2460_v3 = vpop.f32.mrf.mxu3 }
 0x3ee   : >> { %v2471_v7 = vmax.f32 %v2419_v34, %v2460_v3 }
 0x3f0   : >> { %v2479_v58 = vpack.c.bf16 %v2471_v7, %v2471_v7  ;;  %v2518_v23 = vmul.f32 %v2471_v7, %v2471_v7  ;;  %v2502_v27 = vadd.f32 %v2501_v52, %v2471_v7 }
 0x3f2   : >> { %2490 = vst [vmem:[%s4604_s9 + $0x18] sm:$0xf] %v2479_v58  ;;  %v2525_v2 = vadd.f32 %v2524_v15, %v2518_v23 }
 0x3f5   : >> { %v2421_v9 = vpop.f32.mrf.mxu2  ;;  %v2462_v22 = vpop.f32.mrf.mxu3 }
 0x3f6   : >> { %v2472_v5 = vmax.f32 %v2421_v9, %v2462_v22 }
 0x3f8   : >> { %v2480_v30 = vpack.c.bf16 %v2472_v5, %v2472_v5  ;;  %v2503_v63 = vsel %vm573_vm4, %v2472_v5, 0.0  ;;  %v2519_v53 = vmul.f32 %v2472_v5, %v2472_v5 }
 0x3f9   : >> { %v2504_v1 = vadd.f32 %v2503_v63, %v2502_v27 }
 0x3fa   : >> { %v2495_v54 = vsel %vm2493_vm8, %v2480_v30, %v2494_v48  ;;  %v2526_v11 = vsel %vm573_vm4, %v2519_v53, 0.0 }
 0x3fb   : >> { %2496 = vst [vmem:[%s4604_s9 + $0x1c] sm:$0xf] %v2495_v54  ;;  %v2505_v39 = vrot.slane %v2504_v1, 4  ;;  %v2527_v17 = vadd.f32 %v2526_v11, %v2525_v2 }
 0x3fd   : >> { %v2506_v8 = vadd.f32 %v2505_v39, %v2504_v1  ;;  %v2528_v49 = vrot.slane %v2527_v17, 4 }
 0x3ff   : >> { %v2507_v41 = vrot.slane %v2506_v8, 2  ;;  %v2529_v46 = vadd.f32 %v2528_v49, %v2527_v17 }
 0x401   : >> { %v2508_v21 = vadd.f32 %v2507_v41, %v2506_v8  ;;  %v2530_v40 = vrot.slane %v2529_v46, 2 }
 0x403   : >> { %v2509_v12 = vrot.slane %v2508_v21, 1  ;;  %v2531_v38 = vadd.f32 %v2530_v40, %v2529_v46 }
 0x405   : >> { %v2510_v14 = vadd.f32 %v2509_v12, %v2508_v21  ;;  %v2532_v25 = vrot.slane %v2531_v38, 1 }
 0x407   : >> { %v2511_v43 = vadd.f32 %v4753_v16, %v2510_v14   ;;  %v2533_v60 = vadd.f32 %v2532_v25, %v2531_v38  ;;  %282 = sbr.rel (!%p280_p11) target bundleno = 45 (0x2d), region = 99 }
 0x409   : >> { %v2534_v55 = vadd.f32 %v4754_v50, %v2533_v60   ;;  %v4756_v53 = vmov %v2511_v43  ;;  %2535 = vst [vmem:[%s3429_s14] sm:$0x1] (%p280_p11), %v2511_v43 }
 0x40b   : >> { %v4755_v52 = vmov %v2534_v55  ;;  %2536 = vst [vmem:[%s3429_s14 + $0x1] sm:$0x1] (%p280_p11), %v2534_v55 }
 0x40c   : > { %3193 = shalt.err (!%p3190_p4)
}
 0x40d   : > { %3097 = dma.vmem_to_hbm [thread:$0]  (%p3330_p5), %s2559_s28, 32, %s2561_s29, %s2543_s20  }
 0x40e PF: > { %p3103_p7 = scmp.ge.s32.totalorder %s3251_s18, 2  ;;  %s2580_s27 = sand.u32 1, %s3239_s15  }
 0x40f   : > { %s2581_s14 = scalar_lea.sflag [#allocation3], %s2580_s27 }
 0x410   : > { %p3100_p8 = pnand %p3103_p7, %p3334_p6 }
 0x412   : > { %p3101_p9 = pneg %p3100_p8 }
 0x414   : > { %3223 = dma.done.wait (%p3101_p9), %s2581_s14, 32  }
 0x415   : > { %3225 = vsyncadd (%p3101_p9), %s2581_s14, 4294967264  ;;  %p15_p10 = scmp.ge.s32.totalorder %s3317_s21, 4   ;;  %s4757_s15 = smov %s3243_s16 }
 0x416   : > { %s4758_s16 = smov %s3247_s17  ;;  %s4759_s17 = smov %s3328_s24 }
 0x417   : > { %s4760_s18 = smov %s3317_s21  ;;  %17 = sbr.rel (!%p15_p10) target bundleno = 3 (0x3), region = 110 }
 0x41c   :  { %2587 = vsyncpa [#allocation3], 1 }
 0x41d   :  { %2589 = vsyncpa [#allocation3 + $0x1], 1 }

</bundles_post_ra>
